<compile_context>
chip_gen: v6e
topology: v6e:2x2x1
jax: 0.10.0
libtpu: 0.0.40
codegen_flags: <defaults>
</compile_context>

<pallas_src>
import functools

import jax
import jax.numpy as jnp
from jax import lax
from jax.experimental import pallas as pl
from jax.experimental.pallas import tpu as pltpu


# --------------------------------- kernel ---------------------------------

def _bottleneck_kernel(x_ref, w1_ref, b1_ref, w2_ref, b2_ref, o_ref,
                       *, k1, k2, add, fuse_taps, compute_dtype):
    """One batch-block per grid step.

    x_ref  : (NB, L, C1p)    bf16 input block (also the residual source)
    w1_ref : (k1*C1p, C_p)   bf16 BN-folded conv1 weights, tap-major rows
    b1_ref : (1, C_p)        f32  BN-folded conv1 bias
    w2_ref : (k2*C_p, C2p)   bf16 BN-folded conv2 weights, tap-major rows
    b2_ref : (1, C2p)        f32  BN-folded conv2 bias
    o_ref  : (NB, L, C2)     output block (true channel count)
    """
    nb, L, c1p = x_ref.shape
    c_p = b1_ref.shape[-1]
    c2p = b2_ref.shape[-1]
    c2_out = o_ref.shape[-1]
    M = nb * L

    def taps(src3, k, pad):
        # Shift along the per-sequence L axis (axis=1): tap t holds
        # src3[:, l + t - pad, :] at row l, zero outside the sequence.
        nb_, _, c = src3.shape
        out = []
        for t in range(k):
            d = t - pad
            if d == 0:
                out.append(src3)
            elif d > 0:
                z = jnp.zeros((nb_, d, c), src3.dtype)
                out.append(jnp.concatenate([src3[:, d:, :], z], axis=1))
            else:
                z = jnp.zeros((nb_, -d, c), src3.dtype)
                out.append(jnp.concatenate([z, src3[:, :d, :]], axis=1))
        return out

    def conv(src3, w_ref, b_ref, k, c_in_p):
        pad = (k - 1) // 2
        tp = taps(src3, k, pad)
        if fuse_taps:
            # im2col: one K = k*c_in_p contraction keeps the 256-deep MXU of
            # v6e/v7x full and does a single result-buffer round trip.
            a = jnp.concatenate(tp, axis=-1).reshape(M, k * c_in_p)
            acc = jnp.dot(a, w_ref[...], preferred_element_type=jnp.float32)
        else:
            # v5e path: k separate K = c_in_p matmuls already fill its 128x128 MXU.
            acc = jnp.dot(tp[0].reshape(M, c_in_p), w_ref[0:c_in_p, :],
                          preferred_element_type=jnp.float32)
            for t in range(1, k):
                acc += jnp.dot(tp[t].reshape(M, c_in_p),
                               w_ref[t * c_in_p:(t + 1) * c_in_p, :],
                               preferred_element_type=jnp.float32)
        return acc + b_ref[...]

    def silu(v):
        # sigmoid = 1/(1+exp(-v)); approx reciprocal keeps the divide on the EUP slot.
        return v * pl.reciprocal(1.0 + jnp.exp(-v), approx=True)

    x3 = x_ref[...]                                        # (nb, L, C1p) bf16
    acc1 = conv(x3, w1_ref, b1_ref, k1, c1p)               # (M, C_p) f32
    h3 = silu(acc1).astype(compute_dtype).reshape(nb, L, c_p)
    acc2 = conv(h3, w2_ref, b2_ref, k2, c_p)               # (M, C2p) f32
    y = silu(acc2)
    if add:
        # Residual uses the same (bf16, channel-padded) stream as conv1; padded
        # lanes are zero and are dropped by the [..., :c2_out] slice below.
        y = y + x3.reshape(M, c1p).astype(jnp.float32)
    o_ref[...] = y.reshape(nb, L, c2p)[..., :c2_out].astype(o_ref.dtype)


# -------------------------------- wrapper ---------------------------------

def _pad_axis(a, axis, target):
    if a.shape[axis] == target:
        return a
    widths = [(0, 0)] * a.ndim
    widths[axis] = (0, target - a.shape[axis])
    return jnp.pad(a, widths)


def bottleneck_pallas(x_nlc, w1, b1, w2, b2, *, k1, k2, add,
                      batch_block=None, min_grid=2, target_rows=512,
                      lane=128, compute_dtype=jnp.bfloat16, out_dtype=None,
                      fuse_taps=True, vmem_limit_bytes=48 * 1024 * 1024):
    """x_nlc: (N, L, C1). w_i: (k_i, C_in, C_out) BN-folded, tap-major. b_i: (1, C_out).

    Returns (N, L, C2) in `out_dtype` (default compute_dtype / bf16).
    Use min_grid=4 on v7x so both TensorCores get >=2 pipelined steps each.
    """
    N, L, C1 = x_nlc.shape
    assert k1 % 2 == 1 and k2 % 2 == 1, "even kernel sizes change the output length"
    C_ = w1.shape[2]
    C2 = w2.shape[2]
    assert w1.shape == (k1, C1, C_) and w2.shape == (k2, C_, C2)
    assert (not add) or (C1 == C2), "residual add requires c1 == c2"
    assert L % 8 == 0, "L should be a multiple of 8 (ideally 16 for bf16) to avoid relayouts"
    # TODO(synk): grouped conv (g > 1) not implemented; g=1 (the default) only.
    # TODO(synk): for very long L add an L-tile grid axis with halo; here L fits a block.

    out_dtype = compute_dtype if out_dtype is None else out_dtype
    rnd = lambda c: ((c + lane - 1) // lane) * lane
    C1p, C_p, C2p = rnd(C1), rnd(C_), rnd(C2)

    # Lane-dense layout: channel axes padded up to 128 (no-op for real YOLO widths).
    # MXU operands bf16, biases f32. Weights pre-reshaped to 2-D (k*Cin_p, Cout_p),
    # tap-major rows, so the kernel can run one fused contraction per conv.
    x_p = _pad_axis(x_nlc, 2, C1p).astype(compute_dtype)
    w1_p = _pad_axis(_pad_axis(w1, 1, C1p), 2, C_p).astype(compute_dtype).reshape(k1 * C1p, C_p)
    w2_p = _pad_axis(_pad_axis(w2, 1, C_p), 2, C2p).astype(compute_dtype).reshape(k2 * C_p, C2p)
    b1_p = _pad_axis(b1, 1, C_p).astype(jnp.float32)
    b2_p = _pad_axis(b2, 1, C2p).astype(jnp.float32)

    # Batch-block size: grow toward ~target_rows rows (nb*L) per step to amortize
    # the ~0.35us/step overhead, but never let the grid drop below min_grid steps
    # (keeps DMA/compute double-buffering alive and feeds both v7x TensorCores).
    if batch_block is None:
        max_nb = max(1, N // max(1, min_grid))
        nb = 1
        for cand in range(1, N + 1):
            if N % cand == 0 and cand <= max_nb and cand * L <= max(target_rows, L):
                nb = cand
    else:
        nb = batch_block
    assert N % nb == 0
    grid = (N // nb,)

    kernel = functools.partial(_bottleneck_kernel, k1=k1, k2=k2, add=add,
                               fuse_taps=fuse_taps, compute_dtype=compute_dtype)
    # TODO(synk): consider pipeline_mode=pl.Buffered(1) on the constant-index
    # weight/bias specs to free one buffer each (VMEM headroom on v7x).
    return pl.pallas_call(
        kernel,
        out_shape=jax.ShapeDtypeStruct((N, L, C2), out_dtype),
        grid=grid,
        in_specs=[
            pl.BlockSpec((nb, L, C1p), lambda n: (n, 0, 0)),
            pl.BlockSpec((k1 * C1p, C_p), lambda n: (0, 0)),
            pl.BlockSpec((1, C_p), lambda n: (0, 0)),
            pl.BlockSpec((k2 * C_p, C2p), lambda n: (0, 0)),
            pl.BlockSpec((1, C2p), lambda n: (0, 0)),
        ],
        out_specs=pl.BlockSpec((nb, L, C2), lambda n: (n, 0, 0)),
        compiler_params=pltpu.CompilerParams(
            dimension_semantics=("parallel",),
            # Re-derive per generation: v7x has 64 MiB VMEM/TC (leave headroom),
            # v5e/v6e have 128 MiB (can raise further with bigger blocks).
            vmem_limit_bytes=vmem_limit_bytes),
    )(x_p, w1_p, b1_p, w2_p, b2_p)


# -------------------- parameter setup / references (plain JAX) --------------------

def make_conv_bn_params(key, c_in, c_out, k):
    kw, kg, kb, km, kv = jax.random.split(key, 5)
    w = jax.random.normal(kw, (c_out, c_in, k), jnp.float32) * (0.5 / (c_in * k) ** 0.5)
    gamma = 1.0 + 0.1 * jax.random.normal(kg, (c_out,), jnp.float32)
    beta = 0.1 * jax.random.normal(kb, (c_out,), jnp.float32)
    mean = 0.1 * jax.random.normal(km, (c_out,), jnp.float32)
    var = jnp.abs(jax.random.normal(kv, (c_out,), jnp.float32)) + 0.5
    return w, gamma, beta, mean, var


def fold_bn(w, gamma, beta, mean, var, eps=1e-5):
    scale = gamma / jnp.sqrt(var + eps)
    w_f = w * scale[:, None, None]                 # (c_out, c_in, k)
    b_f = beta - mean * scale                      # (c_out,)
    w_k = jnp.transpose(w_f, (2, 1, 0))            # (k, c_in, c_out) tap-major
    return w_k, b_f[None, :]


def ref_conv_bn_silu(x_ncl, w, gamma, beta, mean, var, eps=1e-5):
    pad = (w.shape[2] - 1) // 2
    y = lax.conv_general_dilated(x_ncl, w, (1,), [(pad, pad)],
                                 dimension_numbers=('NCH', 'OIH', 'NCH'),
                                 precision=lax.Precision.HIGHEST)
    scale = gamma / jnp.sqrt(var + eps)
    y = y * scale[None, :, None] + (beta - mean * scale)[None, :, None]
    return y * jax.nn.sigmoid(y)


def ref_bottleneck_folded(x_ncl, w1k, b1k, w2k, b2k, add, quant=None):
    """Reference using folded params; quant=bf16 mirrors the kernel numerics."""
    def q(a):
        return a.astype(quant).astype(jnp.float32) if quant is not None else a

    def conv(x, wk, b):
        w_oiw = jnp.transpose(wk, (2, 1, 0))       # (c_out, c_in, k)
        pad = (wk.shape[0] - 1) // 2
        y = lax.conv_general_dilated(x, w_oiw, (1,), [(pad, pad)],
                                     dimension_numbers=('NCH', 'OIH', 'NCH'),
                                     precision=lax.Precision.HIGHEST)
        return y + b[0][None, :, None]

    xq = q(x_ncl)
    h = conv(xq, q(w1k), b1k)
    h = h * jax.nn.sigmoid(h)
    h = q(h)
    y = conv(h, q(w2k), b2k)
    y = y * jax.nn.sigmoid(y)
    return xq + y if add else y


def _run_config(key, *, N, C1, C2, L, K1, K2, E, shortcut):
    C_ = int(C2 * E)
    add = shortcut and (C1 == C2)
    kx, k1p, k2p = jax.random.split(key, 3)
    x_ncl = jax.random.normal(kx, (N, C1, L), jnp.float32)   # PyTorch-style NCW input

    p1 = make_conv_bn_params(k1p, C1, C_, K1)
    p2 = make_conv_bn_params(k2p, C_, C2, K2)
    w1k, b1k = fold_bn(*p1)
    w2k, b2k = fold_bn(*p2)

    # Pallas kernel (NLC layout internally, bf16 output).
    x_nlc = jnp.transpose(x_ncl, (0, 2, 1))
    out_nlc = bottleneck_pallas(x_nlc, w1k, b1k, w2k, b2k, k1=K1, k2=K2, add=add)
    out_nlc = jax.block_until_ready(out_nlc)
    out_ncl = jnp.transpose(out_nlc, (0, 2, 1)).astype(jnp.float32)

    # Tight check: reference mirroring the kernel's bf16-operand / f32-accumulate numerics.
    ref_q = ref_bottleneck_folded(x_ncl, w1k, b1k, w2k, b2k, add, quant=jnp.bfloat16)
    assert jnp.allclose(out_ncl, ref_q, rtol=2e-2, atol=2e-2), \
        f"max abs err vs bf16-mirrored ref = {jnp.max(jnp.abs(out_ncl - ref_q))}"

    # Loose check: full-f32 PyTorch-eval-semantics reference (unfolded BN).
    # NOTE: residual and output are bf16 in the kernel -> small deviation from exact f32.
    h_ref = ref_conv_bn_silu(x_ncl, *p1)
    y_ref = ref_conv_bn_silu(h_ref, *p2)
    ref = x_ncl + y_ref if add else y_ref
    assert jnp.allclose(out_ncl, ref, rtol=5e-2, atol=5e-2), \
        f"max abs err vs f32 ref = {jnp.max(jnp.abs(out_ncl - ref))}"


if __name__ == "__main__":
    key = jax.random.PRNGKey(0)
    kA, kB, kC = jax.random.split(key, 3)
    # A: toy YOLO widths, padded channels, residual add, nb>1 (batch boundaries inside a block).
    _run_config(kA, N=4, C1=16, C2=16, L=64, K1=3, K2=3, E=0.5, shortcut=True)
    # B: c1 != c2 -> no residual; nb=1 path.
    _run_config(kB, N=2, C1=16, C2=32, L=64, K1=3, K2=3, E=0.5, shortcut=True)
    # C: lane-aligned channels (128) -> exact, lane-dense unpadded output path.
    _run_config(kC, N=2, C1=128, C2=128, L=64, K1=3, K2=3, E=0.5, shortcut=True)
    print("KERNEL_OK")
</pallas_src>

<mosaic_0001>
module attributes {stable_mosaic.version = 11 : i64} {
  func.func @_bottleneck_kernel(%arg0: i32, %arg1: memref<2x64x128xbf16, #tpu.memory_space<vmem>>, %arg2: memref<384x128xbf16, #tpu.memory_space<vmem>>, %arg3: memref<1x128xf32, #tpu.memory_space<vmem>>, %arg4: memref<384x128xbf16, #tpu.memory_space<vmem>>, %arg5: memref<1x128xf32, #tpu.memory_space<vmem>>, %arg6: memref<2x64x16xbf16, #tpu.memory_space<vmem>>) attributes {dimension_semantics = [#tpu.dimension_semantics<parallel>], iteration_bounds = array<i64: 2>, scalar_prefetch = 0 : i64, scratch_operands = 0 : i64, tpu.core_type = #tpu.core_type<tc>, window_params = [{transform_indices = @transform_0, window_bounds = array<i64: 2, 64, 128>}, {pipeline_mode = #tpu.pipeline_mode<synchronous>, transform_indices = @transform_1, window_bounds = array<i64: 384, 128>}, {pipeline_mode = #tpu.pipeline_mode<synchronous>, transform_indices = @transform_2, window_bounds = array<i64: 1, 128>}, {pipeline_mode = #tpu.pipeline_mode<synchronous>, transform_indices = @transform_3, window_bounds = array<i64: 384, 128>}, {pipeline_mode = #tpu.pipeline_mode<synchronous>, transform_indices = @transform_4, window_bounds = array<i64: 1, 128>}, {transform_indices = @transform_5, window_bounds = array<i64: 2, 64, 16>}]} {
    %c0 = arith.constant 0 : index
    %c0_0 = arith.constant 0 : index
    %c0_1 = arith.constant 0 : index
    %0 = vector.load %arg1[%c0, %c0_0, %c0_1] : memref<2x64x128xbf16, #tpu.memory_space<vmem>>, vector<2x64x128xbf16>
    %cst = arith.constant 0.000000e+00 : bf16
    %1 = vector.broadcast %cst : bf16 to vector<2x1x128xbf16>
    %2 = vector.extract_strided_slice %0 {offsets = [0, 0, 0], sizes = [2, 63, 128], strides = [1, 1, 1]} : vector<2x64x128xbf16> to vector<2x63x128xbf16>
    %3 = tpu.concatenate %1, %2 in 1 : vector<2x1x128xbf16>, vector<2x63x128xbf16> -> vector<2x64x128xbf16>
    %cst_2 = arith.constant 0.000000e+00 : bf16
    %4 = vector.broadcast %cst_2 : bf16 to vector<2x1x128xbf16>
    %5 = vector.extract_strided_slice %0 {offsets = [0, 1, 0], sizes = [2, 63, 128], strides = [1, 1, 1]} : vector<2x64x128xbf16> to vector<2x63x128xbf16>
    %6 = tpu.concatenate %5, %4 in 1 : vector<2x63x128xbf16>, vector<2x1x128xbf16> -> vector<2x64x128xbf16>
    %7 = tpu.concatenate %3, %0, %6 in 2 : vector<2x64x128xbf16>, vector<2x64x128xbf16>, vector<2x64x128xbf16> -> vector<2x64x384xbf16>
    %8 = vector.shape_cast %7 : vector<2x64x384xbf16> to vector<128x384xbf16>
    %c0_3 = arith.constant 0 : index
    %c0_4 = arith.constant 0 : index
    %9 = vector.load %arg2[%c0_3, %c0_4] : memref<384x128xbf16, #tpu.memory_space<vmem>>, vector<384x128xbf16>
    %cst_5 = arith.constant dense<0.000000e+00> : vector<128x128xf32>
    %10 = tpu.matmul %8, %9, %cst_5 {dimension_numbers = #tpu.dot_dimension_numbers<[1], [0], [0], [1], [0, 0, 1, 1], [], []>} : vector<128x384xbf16>, vector<384x128xbf16>, vector<128x128xf32> -> vector<128x128xf32>
    %c0_6 = arith.constant 0 : index
    %c0_7 = arith.constant 0 : index
    %11 = vector.load %arg3[%c0_6, %c0_7] : memref<1x128xf32, #tpu.memory_space<vmem>>, vector<1x128xf32>
    %12 = vector.broadcast %11 : vector<1x128xf32> to vector<128x128xf32>
    %13 = arith.addf %10, %12 : vector<128x128xf32>
    %cst_8 = arith.constant 0.000000e+00 : f32
    %14 = vector.broadcast %cst_8 : f32 to vector<128x128xf32>
    %15 = arith.subf %14, %13 : vector<128x128xf32>
    %16 = math.exp %15 : vector<128x128xf32>
    %cst_9 = arith.constant 1.000000e+00 : f32
    %17 = vector.broadcast %cst_9 : f32 to vector<128x128xf32>
    %18 = arith.addf %17, %16 : vector<128x128xf32>
    %19 = tpu.reciprocal %18 {approx = true} : vector<128x128xf32> -> vector<128x128xf32>
    %20 = arith.mulf %13, %19 : vector<128x128xf32>
    %21 = arith.truncf %20 : vector<128x128xf32> to vector<128x128xbf16>
    %22 = vector.shape_cast %21 : vector<128x128xbf16> to vector<2x64x128xbf16>
    %cst_10 = arith.constant 0.000000e+00 : bf16
    %23 = vector.broadcast %cst_10 : bf16 to vector<2x1x128xbf16>
    %24 = vector.extract_strided_slice %22 {offsets = [0, 0, 0], sizes = [2, 63, 128], strides = [1, 1, 1]} : vector<2x64x128xbf16> to vector<2x63x128xbf16>
    %25 = tpu.concatenate %23, %24 in 1 : vector<2x1x128xbf16>, vector<2x63x128xbf16> -> vector<2x64x128xbf16>
    %cst_11 = arith.constant 0.000000e+00 : bf16
    %26 = vector.broadcast %cst_11 : bf16 to vector<2x1x128xbf16>
    %27 = vector.extract_strided_slice %22 {offsets = [0, 1, 0], sizes = [2, 63, 128], strides = [1, 1, 1]} : vector<2x64x128xbf16> to vector<2x63x128xbf16>
    %28 = tpu.concatenate %27, %26 in 1 : vector<2x63x128xbf16>, vector<2x1x128xbf16> -> vector<2x64x128xbf16>
    %29 = tpu.concatenate %25, %22, %28 in 2 : vector<2x64x128xbf16>, vector<2x64x128xbf16>, vector<2x64x128xbf16> -> vector<2x64x384xbf16>
    %30 = vector.shape_cast %29 : vector<2x64x384xbf16> to vector<128x384xbf16>
    %c0_12 = arith.constant 0 : index
    %c0_13 = arith.constant 0 : index
    %31 = vector.load %arg4[%c0_12, %c0_13] : memref<384x128xbf16, #tpu.memory_space<vmem>>, vector<384x128xbf16>
    %cst_14 = arith.constant dense<0.000000e+00> : vector<128x128xf32>
    %32 = tpu.matmul %30, %31, %cst_14 {dimension_numbers = #tpu.dot_dimension_numbers<[1], [0], [0], [1], [0, 0, 1, 1], [], []>} : vector<128x384xbf16>, vector<384x128xbf16>, vector<128x128xf32> -> vector<128x128xf32>
    %c0_15 = arith.constant 0 : index
    %c0_16 = arith.constant 0 : index
    %33 = vector.load %arg5[%c0_15, %c0_16] : memref<1x128xf32, #tpu.memory_space<vmem>>, vector<1x128xf32>
    %34 = vector.broadcast %33 : vector<1x128xf32> to vector<128x128xf32>
    %35 = arith.addf %32, %34 : vector<128x128xf32>
    %cst_17 = arith.constant 0.000000e+00 : f32
    %36 = vector.broadcast %cst_17 : f32 to vector<128x128xf32>
    %37 = arith.subf %36, %35 : vector<128x128xf32>
    %38 = math.exp %37 : vector<128x128xf32>
    %cst_18 = arith.constant 1.000000e+00 : f32
    %39 = vector.broadcast %cst_18 : f32 to vector<128x128xf32>
    %40 = arith.addf %39, %38 : vector<128x128xf32>
    %41 = tpu.reciprocal %40 {approx = true} : vector<128x128xf32> -> vector<128x128xf32>
    %42 = arith.mulf %35, %41 : vector<128x128xf32>
    %43 = vector.shape_cast %0 : vector<2x64x128xbf16> to vector<128x128xbf16>
    %44 = arith.extf %43 : vector<128x128xbf16> to vector<128x128xf32>
    %45 = arith.addf %42, %44 : vector<128x128xf32>
    %46 = vector.shape_cast %45 : vector<128x128xf32> to vector<2x64x128xf32>
    %47 = vector.extract_strided_slice %46 {offsets = [0, 0, 0], sizes = [2, 64, 16], strides = [1, 1, 1]} : vector<2x64x128xf32> to vector<2x64x16xf32>
    %48 = arith.truncf %47 : vector<2x64x16xf32> to vector<2x64x16xbf16>
    %c0_19 = arith.constant 0 : index
    %c0_20 = arith.constant 0 : index
    %c0_21 = arith.constant 0 : index
    %49 = vector.load %arg6[%c0_19, %c0_20, %c0_21] : memref<2x64x16xbf16, #tpu.memory_space<vmem>>, vector<2x64x16xbf16>
    tpu.vector_store %arg6[%c0_19, %c0_20, %c0_21], %48 {strides = array<i32>} : memref<2x64x16xbf16, #tpu.memory_space<vmem>>, vector<2x64x16xbf16>,
    return
  }
  func.func @transform_0(%arg0: i32) -> (i32, i32, i32) {
    %c0_i32 = arith.constant 0 : i32
    %c0_i32_0 = arith.constant 0 : i32
    %c0_i32_1 = arith.constant 0 : i32
    return %arg0, %c0_i32, %c0_i32_0 : i32, i32, i32
  }
  func.func @transform_1(%arg0: i32) -> (i32, i32) {
    %c0_i32 = arith.constant 0 : i32
    %c0_i32_0 = arith.constant 0 : i32
    %c0_i32_1 = arith.constant 0 : i32
    return %c0_i32, %c0_i32_0 : i32, i32
  }
  func.func @transform_2(%arg0: i32) -> (i32, i32) {
    %c0_i32 = arith.constant 0 : i32
    %c0_i32_0 = arith.constant 0 : i32
    %c0_i32_1 = arith.constant 0 : i32
    return %c0_i32, %c0_i32_0 : i32, i32
  }
  func.func @transform_3(%arg0: i32) -> (i32, i32) {
    %c0_i32 = arith.constant 0 : i32
    %c0_i32_0 = arith.constant 0 : i32
    %c0_i32_1 = arith.constant 0 : i32
    return %c0_i32, %c0_i32_0 : i32, i32
  }
  func.func @transform_4(%arg0: i32) -> (i32, i32) {
    %c0_i32 = arith.constant 0 : i32
    %c0_i32_0 = arith.constant 0 : i32
    %c0_i32_1 = arith.constant 0 : i32
    return %c0_i32, %c0_i32_0 : i32, i32
  }
  func.func @transform_5(%arg0: i32) -> (i32, i32, i32) {
    %c0_i32 = arith.constant 0 : i32
    %c0_i32_0 = arith.constant 0 : i32
    %c0_i32_1 = arith.constant 0 : i32
    return %arg0, %c0_i32, %c0_i32_0 : i32, i32, i32
  }
}

</mosaic_0001>

<bundles_post_ra>
// kernel: tpu_custom_call.1
= control target key start
LH: loop header
LB: loop body
LE: loop exit
PB: predicated region body
PF: predicated region fallthrough
CT: control target
= control target key end

     0   :  { %10 = vsyncpa [#allocation3], 0  ;;  %s2961_s0 = inlined_call_operand.hbm [shape: bf16[4,64,128], index: 0, kind: input, shape index: {}]   ;;  %s2962_s1 = inlined_call_operand.hbm [shape: bf16[384,128], index: 1, kind: input, shape index: {}]   ;;  %s2963_s2 = inlined_call_operand.vmem [shape: f32[1,128], index: 2, kind: input, shape index: {}]   ;;  %s2964_s3 = inlined_call_operand.hbm [shape: bf16[384,128], index: 3, kind: input, shape index: {}]   ;;  %s2965_s4 = inlined_call_operand.vmem [shape: f32[1,128], index: 4, kind: input, shape index: {}]   ;;  %s2966_s5 = inlined_call_operand.vmem [shape: bf16[4,64,16], index: 5, kind: output, shape index: {}]  }
   0x1   :  { %12 = vsyncpa [#allocation3 + $0x1], 0 }
   0x2   :  { %13 = vsyncpa [#allocation5], 0  ;;  %s2498_s18 = smov 0   ;;  %s2500_s19 = smov 0  }
   0x3   :  { %s2502_s20 = smov 0   ;;  %s2504_s21 = smov 0  }
   0x4 LB: > { %s1745_s22 = sadd.s32 4294967295, %s2461_s21   ;;  %p39_p0 = scmp.ne.s32.totalorder %s2453_s19, %s2449_s18  ;;  %s2461_s21 = sphi %s2504_s21, %s2987_s21   ;;  %s2457_s20 = sphi %s2502_s20, %s2986_s20   ;;  %s2453_s19 = sphi %s2500_s19, %s2985_s19   ;;  %s2449_s18 = sphi %s2498_s18, %s2984_s18  }
   0x5   : > { %p2520_p1 = scmp.eq.s32.totalorder %s1745_s22, 0  ;;  %p1747_p2 = scmp.ge.s32.totalorder %s2461_s21, 1 }
   0x6   : > { %p160_p3 = scmp.lt.s32.totalorder %s2461_s21, 3  ;;  %s2463_s26 = smov [#allocation4]  }
   0x7   : > { %s2971_s23 = scalar_select %p2520_p1, 1, 0 }
   0x8   : > { %p2528_p4 = por %p2520_p1, %p39_p0  ;;  %p2532_p5 = pnand %p1747_p2, %p160_p3 }
   0x9   : > { %s172_s27 = sshll.u32 %s2463_s26, 4  ;;  %s2464_s29 = smov [#allocation6]   ;;  %s173_s27 = int_to_ptr.vmem [resolvable:$true] %s172_s27 }
   0xa   : > { %s2972_s24 = scalar_select %p2528_p4, 1, 0 }
   0xb   : > { %s2973_s25 = scalar_select %p2532_p5, 1, 0 }
   0xc   : > { %p2091_p6 = pneg %p2532_p5  ;;  %s188_s30 = sshll.u32 %s2464_s29, 4  ;;  %s189_s30 = int_to_ptr.vmem [resolvable:$true] %s188_s30 }
   0xd   : > { %s2354_s6 = scalar_lea.vmem %s173_s27, 3072  ;;  %p2362_p12 = scmp.lt.s32.totalorder %s173_s27, %s173_s27 }
   0xe   : > { %p2540_p7 = pnand %p2091_p6, %p2520_p1  ;;  %p2355_p9 = scmp.ne.s32.totalorder %s173_s27, %s2354_s6 }
   0xf   : > { %p2363_p13 = scmp.lt.s32.totalorder %s2354_s6, %s2354_s6 }
  0x10   : > { %p2345_p8 = pneg %p2540_p7 }
  0x11   : > { %p2364_p0 = por %p2363_p13, %p2362_p12 }
  0x12   : > { %p2357_p10 = pnand %p2355_p9, %p2345_p8 }
  0x14   : > { %p2358_p11 = pneg %p2357_p10 }
  0x16   : > { %p2365_p2 = pnand %p2364_p0, %p2358_p11 }
  0x18   : > { %2368 = shalt.err (!%p2365_p2)
}
  0x19   : > { %s2465_s7 = smov 64   ;;  %s2466_s8 = smov 4  }
  0x1a   : > { %2094 = dma.hbm_to_vmem [thread:$0]  (!%p2540_p7), %s2962_s1, 3072, %s173_s27, [#allocation5], %s2465_s7, %s2465_s7, %s2466_s8  }
  0x1b   : > { %s2380_s11 = scalar_lea.vmem %s189_s30, 3072  ;;  %p2388_p10 = scmp.lt.s32.totalorder %s189_s30, %s189_s30 }
  0x1c   : > { %p2381_p3 = scmp.ne.s32.totalorder %s189_s30, %s2380_s11  ;;  %p2389_p11 = scmp.lt.s32.totalorder %s2380_s11, %s2380_s11 }
  0x1e   : > { %p2383_p6 = pnand %p2381_p3, %p2345_p8  ;;  %p2390_p12 = por %p2389_p11, %p2388_p10 }
  0x20   : > { %p2384_p9 = pneg %p2383_p6 }
  0x22   : > { %p2391_p13 = pnand %p2390_p12, %p2384_p9 }
  0x24   : > { %2394 = shalt.err (!%p2391_p13)
}
  0x25   : > { %2097 = dma.hbm_to_vmem [thread:$0]  (!%p2540_p7), %s2964_s3, 3072, %s189_s30, [#allocation5], %s2465_s7, %s2465_s7, %s2466_s8  }
  0x26   : > { %s2569_s14 = sadd.s32 1, %s2461_s21   ;;  %s26_s15 = sadd.s32 1, %s2457_s20 }
  0x27   : > { %s23_s16 = ssub.s32 %s2461_s21, %s2569_s14  ;;  %p33_p8 = scmp.ne.s32.totalorder %s2457_s20, %s2453_s19 }
  0x28   : > { %p24_p0 = scmp.eq.s32.totalorder %s23_s16, 0  ;;  %p34_p2 = scmp.eq.s32.totalorder %s2461_s21, 0 }
  0x29   : > { %p2104_p3 = scmp.lt.s32.totalorder %s2461_s21, 2  ;;  %s205_s17 = sand.u32 1, %s2457_s20  }
  0x2a   : > { %s2580_s18 = scalar_select %p24_p0, %s2457_s20, %s26_s15  }
  0x2b   : > { %p35_p6 = por %p34_p2, %p33_p8  ;;  %s1751_s26 = sshll.u32 %s205_s17, 6 }
  0x2c   : > { %s1839_s27 = sshll.u32 %s2461_s21, 10  ;;  %s209_s30 = scalar_lea.vmem [#allocation2], %s1751_s26 }
  0x2d   : > { %s2586_s6 = scalar_lea.hbm %s2961_s0, %s1839_s27  ;;  %s217_s9 = sshll.u32 %s209_s30, 4  ;;  %s2592_s9 = int_to_ptr.vmem [resolvable:$true] %s217_s9 }
  0x2e   : > { %p2588_p7 = pnand %p2104_p3, %p35_p6  ;;  %s2594_s11 = scalar_lea.sflag [#allocation3], %s205_s17 }
  0x2f   : > { %s2395_s12 = scalar_lea.hbm %s2586_s6, 1024  ;;  %s2400_s16 = scalar_lea.hbm %s2961_s0, 2048 }
  0x30   : > { %p2396_p9 = scmp.ne.s32.totalorder %s2586_s6, %s2395_s12  ;;  %p2397_p10 = pneg %p2588_p7 }
  0x31   : > { %p2401_p13 = scmp.lt.s32.totalorder %s2586_s6, %s2961_s0  ;;  %p2402_p8 = scmp.lt.s32.totalorder %s2400_s16, %s2395_s12 }
  0x32   : > { %p2398_p11 = pnand %p2397_p10, %p2396_p9 }
  0x33   : > { %p2403_p0 = por %p2402_p8, %p2401_p13 }
  0x34   : > { %p2399_p12 = pneg %p2398_p11 }
  0x36   : > { %p2404_p2 = pnand %p2403_p0, %p2399_p12 }
  0x38   : > { %2407 = shalt.err (!%p2404_p2)
}
  0x39   : > { %s2408_s17 = scalar_lea.vmem %s2592_s9, 1024  ;;  %s2467_s28 = smov [#allocation2]  }
  0x3a   : > { %p2409_p3 = scmp.ne.s32.totalorder %s2592_s9, %s2408_s17  ;;  %s2413_s29 = sshll.u32 %s2467_s28, 4  ;;  %s2414_s29 = int_to_ptr.vmem [resolvable:$false] %s2413_s29 }
  0x3b   : > { %s2415_s30 = scalar_lea.vmem %s2414_s29, 2048  ;;  %p2416_p11 = scmp.lt.s32.totalorder %s2592_s9, %s2414_s29 }
  0x3c   : > { %p2411_p6 = pnand %p2409_p3, %p2397_p10  ;;  %p2417_p1 = scmp.lt.s32.totalorder %s2415_s30, %s2408_s17 }
  0x3e   : > { %p2412_p9 = pneg %p2411_p6  ;;  %p2418_p4 = por %p2417_p1, %p2416_p11 }
  0x40   : > { %p2419_p5 = pnand %p2418_p4, %p2412_p9 }
  0x42   : > { %2422 = shalt.err (!%p2419_p5)
}
  0x43   : > { %2101 = dma.hbm_to_vmem [thread:$0]  (!%p2588_p7), %s2586_s6, 1024, %s2592_s9, %s2594_s11, %s2465_s7, %s2465_s7, %s2466_s8  }
  0x44   : > { %p2976_p10 = scmp.ne.s32.totalorder %s2973_s25, 0 }
  0x45   : > { %s231_s12 = sand.u32 (!%p2976_p10), 1, %s2453_s19   ;;  %p2977_p1 = scmp.ne.s32.totalorder (!%p2976_p10), %s2972_s24, 0 }
  0x46   : > { %229 = sbr.rel (%p2976_p10) target bundleno = 667 (0x29b), region = 40  ;;  %s1756_s13 = sshll.u32 (!%p2976_p10), %s231_s12, 6 }
  0x47   : > { %s232_s15 = scalar_lea.sflag (!%p2976_p10), [#allocation3], %s231_s12  ;;  %s2621_s16 = scalar_lea.vmem (!%p2976_p10), [#allocation2], %s1756_s13 }
  0x4b   : > { %2440 = dma.done.wait (%p2977_p1), %s232_s15, 1024  }
  0x4c   : > { %2442 = vsyncadd (%p2977_p1), %s232_s15, 4294966272  ;;  %p2978_p4 = scmp.ne.s32.totalorder %s2971_s23, 0 }
  0x4e   : > { %2444 = dma.done.wait (%p2978_p4), [#allocation5], 6144  }
  0x4f   : > { %2446 = vsyncadd (%p2978_p4), [#allocation5], 4294961152  ;;  %v2143_v0 = vld [vmem:[#allocation4 + $0x78] sm:$0xff]   ;;  %v2146_v3 = vld [vmem:[#allocation4 + $0x70] sm:$0xff]   ;;  %vm411_vm0 = vsmask.f32 7424 }
  0x50   : > { %v2144_v1 = vld [vmem:[#allocation4 + $0xb8] sm:$0xff]   ;;  %1857 = vmatprep.subr.bf16.mxu0 %v2143_v0  ;;  %v2147_v4 = vld [vmem:[#allocation4 + $0xb0] sm:$0xff]   ;;  %v2149_v6 = vld [vmem:[#allocation4 + $0x68] sm:$0xff]   ;;  %vm336_vm1 = vsmask.f32 256  ;;  %vm407_vm2 = vcmask 1040384  }
  0x51   : > { %v2145_v2 = vld [vmem:[#allocation4 + $0x38] sm:$0xff]   ;;  %2017 = vmatprep.subr.bf16.mxu1 %v2144_v1  ;;  %v2148_v5 = vld [vmem:[#allocation4 + $0x30] sm:$0xff]   ;;  %v2150_v7 = vld [vmem:[#allocation4 + $0xa8] sm:$0xff]   ;;  %vm442_vm4 = vcmask 1047552   ;;  %s1759_s8 = sshll.u32 %s1745_s22, 1  ;;  %vm1640_vm6 = vcmask 125952  }
  0x52   : > { %1858 = vmatpush3.bf16.msra.mxu0 %v2145_v2  ;;  %2018 = vmatpush3.bf16.msra.mxu1 %v2144_v1  ;;  %v2151_v8 = vld [vmem:[#allocation4 + $0x28] sm:$0xff]   ;;  %v2152_v9 = vld [vmem:[#allocation4 + $0x60] sm:$0xff]   ;;  %v2155_v12 = vld [vmem:[#allocation4 + $0x58] sm:$0xff]   ;;  %p273_p5 = scmp.lt.s32.totalorder %s1759_s8, 3 }
  0x53   : > { %1859 = vmatprep.subr.bf16.mxu0 %v2146_v3  ;;  %2019 = vmatprep.subr.bf16.mxu1 %v2147_v4  ;;  %v2153_v10 = vld [vmem:[#allocation4 + $0xa0] sm:$0xff]   ;;  %v2156_v13 = vld [vmem:[#allocation4 + $0x98] sm:$0xff]   ;;  %v2158_v15 = vld [vmem:[#allocation4 + $0x50] sm:$0xff]  }
  0x54   : > { %v2154_v11 = vld [vmem:[#allocation4 + $0x20] sm:$0xff]   ;;  %v2157_v14 = vld [vmem:[#allocation4 + $0x18] sm:$0xff]   ;;  %v2159_v16 = vld [vmem:[#allocation4 + $0x90] sm:$0xff]   ;;  %s2989_s8 = smov (!%p273_p5, %s1759_s8), 3 }
  0x55   : > { %v2160_v17 = vld [vmem:[#allocation4 + $0x10] sm:$0xff]   ;;  %v2161_v18 = vld [vmem:[#allocation4 + $0x48] sm:$0xff]   ;;  %v280_v21 = vld [vmem:[%s2621_s16] sm:$0xff]   ;;  %s1840_s21 = sshll.u32 %s2989_s8, 5 }
  0x56   : > { %1860 = vmatpush3.bf16.msra.mxu0 %v2148_v5  ;;  %2020 = vmatpush3.bf16.msra.mxu1 %v2147_v4  ;;  %v2162_v19 = vld [vmem:[#allocation4 + $0x88] sm:$0xff]   ;;  %v2634_v23 = vld [vmem:[%s2621_s16 + $0x10] sm:$0xff]   ;;  %v2164_v24 = vld [vmem:[#allocation4 + $0x40] sm:$0xff]   ;;  %v338_v29 = vshrl.u32 %v280_v21, 16  ;;  %v341_v30 = vshll.u32 %v280_v21, 16  ;;  %s2874_s9 = scalar_lea.vmem %s2966_s5, %s1840_s21 }
  0x57   : > { %1861 = vmatprep.subr.bf16.mxu0 %v2149_v6  ;;  %2021 = vmatprep.subr.bf16.mxu1 %v2150_v7  ;;  %v2163_v20 = vld [vmem:[#allocation4 + $0x8] sm:$0xff]   ;;  %v2165_v25 = vld [vmem:[#allocation4 + $0x80] sm:$0xff]   ;;  %v2637_v26 = vld [vmem:[%s2621_s16 + $0x18] sm:$0xff]   ;;  %v356_v33 = vshll.u32 %v2634_v23, 16  ;;  %v353_v34 = vshrl.u32 %v2634_v23, 16 }
  0x58   : > { %v282_v22 = vld [vmem:[%s2621_s16 + $0x8] sm:$0xff]   ;;  %v2166_v27 = vld [vmem:[#allocation4] sm:$0xff]   ;;  %685 = vmatprep.mubr.bf16.mxu0 %v280_v21  ;;  %v364_v35 = vshll.u32 %v2637_v26, 16  ;;  %v412_v37 = vrot.slane %v341_v30, 1  ;;  %v340_v39 = vrot.slane %v338_v29, 7  ;;  %vm2650_vm3 = vmand %vm407_vm2, %vm336_vm1  ;;  %v361_v44 = vshrl.u32 %v2637_v26, 16 }
  0x59   : > { %v2640_v28 = vld [vmem:[%s2621_s16 + $0x20] sm:$0xff]   ;;  %v348_v31 = vshll.u32 %v282_v22, 16  ;;  %v345_v32 = vshrl.u32 %v282_v22, 16  ;;  %v2646_v36 = vld [vmem:[%s2621_s16 + $0x28] sm:$0xff]   ;;  %v417_v41 = vrot.slane %v356_v33, 1  ;;  %v2658_v49 = vld [vmem:[%s2621_s16 + $0x30] sm:$0xff]  }
  0x5a   : > { %1862 = vmatpush3.bf16.msra.mxu0 %v2151_v8  ;;  %2022 = vmatpush3.bf16.msra.mxu1 %v2150_v7  ;;  %v420_v43 = vrot.slane %v364_v35, 1  ;;  %v413_v45 = vor.u32 %v412_v37, %v338_v29  ;;  %v343_v46 = vor.u32 %v341_v30, %v340_v39  ;;  %v2665_v53 = vld [vmem:[%s2621_s16 + $0x38] sm:$0xff]   ;;  %v369_v57 = vshrl.u32 %v2640_v28, 16  ;;  %vm2673_vm5 = vmand %vm442_vm4, %vm411_vm0  ;;  %v2179_v37 = vld [vmem:[#allocation6 + $0x30] sm:$0xff]  }
  0x5b   : > { %1863 = vmatprep.subr.bf16.mxu0 %v2152_v9  ;;  %2023 = vmatprep.subr.bf16.mxu1 %v2153_v10  ;;  %v414_v38 = vrot.slane %v348_v31, 1  ;;  %v347_v42 = vrot.slane %v345_v32, 7  ;;  %v419_v48 = vor.u32 %v417_v41, %v353_v34  ;;  %v372_v58 = vshll.u32 %v2640_v28, 16 }
  0x5c   : > { %v409_v51 = vsel %vm2650_vm3, 0, %v343_v46  ;;  %v422_v56 = vor.u32 %v420_v43, %v361_v44  ;;  %v379_v59 = vshll.u32 %v2646_v36, 16  ;;  %v387_v63 = vshll.u32 %v2658_v49, 16  ;;  %v2183_v46 = vld [vmem:[#allocation6 + $0xb0] sm:$0xff]  }
  0x5d   : > { %v416_v47 = vor.u32 %v414_v38, %v345_v32  ;;  %v415_v50 = vsel %vm411_vm0, %v413_v45, %v414_v38  ;;  %v350_v54 = vor.u32 %v348_v31, %v347_v42  ;;  %v421_v55 = vsel %vm411_vm0, %v419_v48, %v420_v43  ;;  %v2180_v38 = vld [vmem:[#allocation6 + $0x68] sm:$0xff]   ;;  %v2178_v43 = vld [vmem:[#allocation6 + $0xb8] sm:$0xff]   ;;  %v2189_v48 = vld [vmem:[#allocation6 + $0x10] sm:$0xff]  }
  0x5e   : > { %1864 = vmatpush3.bf16.msra.mxu0 %v2154_v11  ;;  %2024 = vmatpush3.bf16.msra.mxu1 %v2153_v10  ;;  %v423_v61 = vrot.slane %v372_v58, 1  ;;  %v425_v62 = vrot.slane %v379_v59, 1  ;;  %v363_v0 = vrot.slane %v361_v44, 7  ;;  %v444_v2 = vsel %vm2673_vm5, %v422_v56, 0  ;;  %v2185_v44 = vld [vmem:[#allocation6 + $0x58] sm:$0xff]   ;;  %v2196_v56 = vld [vmem:[#allocation6 + $0x90] sm:$0xff]  }
  0x5f   : > { %1865 = vmatprep.subr.bf16.mxu0 %v2155_v12  ;;  %2025 = vmatprep.subr.bf16.mxu1 %v2156_v13  ;;  %v418_v52 = vsel %vm411_vm0, %v416_v47, %v417_v41  ;;  %v351_v1 = vsel %vm336_vm1, %v340_v39, %v350_v54  ;;  %v355_v3 = vrot.slane %v353_v34, 7  ;;  %v376_v5 = vshrl.u32 %v2646_v36, 16  ;;  %v2175_v34 = vld [vmem:[#allocation6 + $0x78] sm:$0xff]   ;;  %v2181_v39 = vld [vmem:[#allocation6 + $0x28] sm:$0xff]   ;;  %v2182_v41 = vld [vmem:[#allocation6 + $0x60] sm:$0xff]  }
  0x60   : > { %2033 = vmatprep.mubr.bf16.mxu1 %v415_v50  ;;  %v424_v4 = vor.u32 %v423_v61, %v369_v57  ;;  %v428_v6 = vrot.slane %v387_v63, 1  ;;  %v384_v7 = vshrl.u32 %v2658_v49, 16  ;;  %v395_v8 = vshll.u32 %v2665_v53, 16  ;;  %v2186_v45 = vld [vmem:[#allocation6 + $0x18] sm:$0xff]   ;;  %v2187_v47 = vld [vmem:[#allocation6 + $0x50] sm:$0xff]   ;;  %v2190_v50 = vld [vmem:[#allocation6 + $0x48] sm:$0xff]  }
  0x61   : > { %v358_v10 = vor.u32 %v356_v33, %v355_v3  ;;  %v427_v11 = vor.u32 %v425_v62, %v376_v5  ;;  %v371_v21 = vrot.slane %v369_v57, 7  ;;  %v2194_v54 = vld [vmem:[#allocation6] sm:$0xff]   ;;  %v2197_v57 = vld [vmem:[#allocation6 + $0x88] sm:$0xff]  }
  0x62   : > { %1866 = vmatpush3.bf16.msra.mxu0 %v2157_v14  ;;  %2026 = vmatpush3.bf16.msra.mxu1 %v2156_v13  ;;  %v426_v9 = vsel %vm411_vm0, %v424_v4, %v425_v62  ;;  %v431_v12 = vrot.slane %v395_v8, 1  ;;  %v392_v13 = vshrl.u32 %v2665_v53, 16  ;;  %v430_v14 = vor.u32 %v428_v6, %v384_v7 }
  0x63   : > { %1867 = vmatprep.subr.bf16.mxu0 %v2158_v15  ;;  %2027 = vmatprep.subr.bf16.mxu1 %v2159_v16  ;;  %v359_v15 = vsel %vm336_vm1, %v347_v42, %v358_v10  ;;  %v386_v29 = vrot.slane %v384_v7, 7  ;;  %v2184_v42 = vld [vmem:[#allocation6 + $0x20] sm:$0xff]  }
  0x64   : > { %v394_v31 = vrot.slane %v392_v13, 7 }
  0x65   : > { %v389_v30 = vor.u32 %v387_v63, %v386_v29  ;;  %v2708_v63 = vld [vmem:[%s2963_s2] ss:$0 sm:$0xff] }
  0x66   : > { %1868 = vmatpush3.bf16.msra.mxu0 %v2160_v17  ;;  %2028 = vmatpush3.bf16.msra.mxu1 %v2159_v16  ;;  %v429_v16 = vsel %vm411_vm0, %v427_v11, %v428_v6  ;;  %v432_v17 = vsel %vm411_vm0, %v430_v14, %v431_v12 }
  0x67   : > { %1869 = vmatprep.subr.bf16.mxu0 %v2161_v18  ;;  %2029 = vmatprep.subr.bf16.mxu1 %v2162_v19  ;;  %v366_v18 = vor.u32 %v364_v35, %v363_v0  ;;  %v2176_v35 = vld [vmem:[#allocation6 + $0x38] sm:$0xff]  }
  0x6a   : > { %1870 = vmatpush3.bf16.msra.mxu0 %v2163_v20  ;;  %2030 = vmatpush3.bf16.msra.mxu1 %v2162_v19  ;;  %v433_v19 = vor.u32 %v431_v12, %v392_v13  ;;  %v367_v20 = vsel %vm336_vm1, %v355_v3, %v366_v18 }
  0x6b   : > { %1871 = vmatprep.subr.bf16.mxu0 %v2164_v24  ;;  %2031 = vmatprep.subr.bf16.mxu1 %v2165_v25 }
  0x6e   : > { %1872 = vmatpush3.bf16.msra.mxu0 %v2166_v27  ;;  %2032 = vmatpush3.bf16.msra.mxu1 %v2165_v25  ;;  %v378_v25 = vrot.slane %v376_v5, 7 }
  0x6f   : > { %1937 = vmatprep.subr.bf16.mxu1 %v2175_v34  ;;  %2049 = vmatprep.subr.bf16.mxu0 %v2178_v43 }
  0x70   : > { %v390_v32 = vsel %vm336_vm1, %v378_v25, %v389_v30 }
  0x71   : > { %686 = vmatmul.mubr.bf16.vlgmr.msra.gmra.mxu0 %v409_v51  ;;  %2034 = vmatmul.mubr.bf16.vlgmr.msra.gmra.mxu1 %v418_v52  ;;  %v2191_v51 = vld [vmem:[#allocation6 + $0x8] sm:$0xff]   ;;  %v2192_v52 = vld [vmem:[#allocation6 + $0xa0] sm:$0xff]  }
  0x72   : > { %693 = vmatprep.mubr.bf16.mxu0 %v282_v22  ;;  %2037 = vmatprep.mubr.bf16.mxu1 %v421_v55  ;;  %v445_v22 = vsel %vm2673_vm5, %v433_v19, 0  ;;  %v2195_v55 = vld [vmem:[#allocation6 + $0x98] sm:$0xff]  }
  0x73   : > { %1938 = vmatpush3.bf16.msra.mxu1 %v2176_v35  ;;  %2050 = vmatpush3.bf16.msra.mxu0 %v2178_v43 }
  0x74   : > { %2051 = vmatprep.subr.bf16.mxu0 %v2183_v46 }
  0x77   : > { %2052 = vmatpush3.bf16.msra.mxu0 %v2183_v46 }
  0x79   : > { %694 = vmatmul.mubr.bf16.gmra.mxu0 %v351_v1  ;;  %2038 = vmatmul.mubr.bf16.gmra.mxu1 %v444_v2 }
  0x7a   : > { %701 = vmatprep.mubr.bf16.mxu0 %v2634_v23  ;;  %2041 = vmatprep.mubr.bf16.mxu1 %v426_v9  ;;  %v374_v23 = vor.u32 %v372_v58, %v371_v21  ;;  %v2198_v58 = vld [vmem:[#allocation6 + $0x80] sm:$0xff]  }
  0x7c   : > { %v410_v24 = vsel %vm2650_vm3, 0, %v374_v23 }
  0x81   : > { %702 = vmatmul.mubr.bf16.gmra.mxu0 %v359_v15  ;;  %2042 = vmatmul.mubr.bf16.gmra.mxu1 %v429_v16 }
  0x82   : > { %709 = vmatprep.mubr.bf16.mxu0 %v2637_v26  ;;  %2045 = vmatprep.mubr.bf16.mxu1 %v432_v17  ;;  %v381_v26 = vor.u32 %v379_v59, %v378_v25 }
  0x84   : > { %v382_v27 = vsel %vm336_vm1, %v371_v21, %v381_v26 }
  0x89   : > { %710 = vmatmul.mubr.bf16.gmra.mxu0 %v367_v20  ;;  %2046 = vmatmul.mubr.bf16.gmra.mxu1 %v445_v22 }
  0x8a   : > { %717 = vmatprep.mubr.bf16.mxu0 %v2640_v28  ;;  %v397_v28 = vor.u32 %v395_v8, %v394_v31 }
  0x8c   : > { %v398_v33 = vsel %vm336_vm1, %v386_v29, %v397_v28 }
  0x91   : > { %718 = vmatmul.mubr.bf16.gmra.mxu0 %v410_v24 }
  0x92   : > { %725 = vmatprep.mubr.bf16.mxu0 %v2646_v36  ;;  %v2177_v36 = vld [vmem:[#allocation6 + $0x70] sm:$0xff]  }
  0x93   : > { %1939 = vmatprep.subr.bf16.mxu1 %v2177_v36 }
  0x94   : > { %1940 = vmatpush3.bf16.msra.mxu1 %v2179_v37 }
  0x95   : > { %1941 = vmatprep.subr.bf16.mxu1 %v2180_v38 }
  0x98   : > { %1942 = vmatpush3.bf16.msra.mxu1 %v2181_v39 }
  0x99   : > { %726 = vmatmul.mubr.bf16.gmra.mxu0 %v382_v27  ;;  %1943 = vmatprep.subr.bf16.mxu1 %v2182_v41 }
  0x9a   : > { %733 = vmatprep.mubr.bf16.mxu0 %v2658_v49  ;;  %v2188_v49 = vld [vmem:[#allocation6 + $0xa8] sm:$0xff]  }
  0x9b   : > { %2053 = vmatprep.subr.bf16.mxu0 %v2188_v49 }
  0x9c   : > { %1944 = vmatpush3.bf16.msra.mxu1 %v2184_v42  ;;  %2054 = vmatpush3.bf16.msra.mxu0 %v2188_v49 }
  0x9d   : > { %1945 = vmatprep.subr.bf16.mxu1 %v2185_v44  ;;  %2055 = vmatprep.subr.bf16.mxu0 %v2192_v52 }
  0xa0   : > { %1946 = vmatpush3.bf16.msra.mxu1 %v2186_v45  ;;  %2056 = vmatpush3.bf16.msra.mxu0 %v2192_v52 }
  0xa1   : > { %734 = vmatmul.mubr.bf16.gmra.mxu0 %v390_v32  ;;  %1947 = vmatprep.subr.bf16.mxu1 %v2187_v47 }
  0xa2   : > { %741 = vmatprep.mubr.bf16.mxu0 %v2665_v53  ;;  %v2193_v53 = vld [vmem:[#allocation6 + $0x40] sm:$0xff]   ;;  %2057 = vmatprep.subr.bf16.mxu0 %v2195_v55 }
  0xa4   : > { %1948 = vmatpush3.bf16.msra.mxu1 %v2189_v48  ;;  %2058 = vmatpush3.bf16.msra.mxu0 %v2195_v55 }
  0xa5   : > { %1949 = vmatprep.subr.bf16.mxu1 %v2190_v50  ;;  %2059 = vmatprep.subr.bf16.mxu0 %v2196_v56 }
  0xa8   : > { %1950 = vmatpush3.bf16.msra.mxu1 %v2191_v51  ;;  %2060 = vmatpush3.bf16.msra.mxu0 %v2196_v56 }
  0xa9   : > { %742 = vmatmul.mubr.bf16.gmra.mxu0 %v398_v33  ;;  %1951 = vmatprep.subr.bf16.mxu1 %v2193_v53 }
  0xaa   : > { %2061 = vmatprep.subr.bf16.mxu0 %v2197_v57 }
  0xac   : > { %1952 = vmatpush3.bf16.msra.mxu1 %v2194_v54  ;;  %2062 = vmatpush3.bf16.msra.mxu0 %v2197_v57 }
  0xad   : > { %2063 = vmatprep.subr.bf16.mxu0 %v2198_v58 }
  0xb0   : > { %2064 = vmatpush3.bf16.msra.mxu0 %v2198_v58 }
 0x131   : > { %v1873_v59 = vpop.f32.mrf.mxu0  ;;  %v2035_v61 = vpop.f32.mrf.mxu1 }
 0x133   : > { %v1874_v62 = vpop.f32.mrf.mxu0  ;;  %v784_v0 = vpop.f32.mrf.mxu1 }
 0x134   : > { %v1875_v1 = vadd.f32 %v1874_v62, %v1873_v59 }
 0x135   : > { %v1876_v2 = vpop.f32.mrf.mxu0  ;;  %v2036_v4 = vpop.f32.mrf.mxu1 }
 0x136   : > { %v688_v3 = vadd.f32 %v1875_v1, %v2708_v63 }
 0x137   : > { %v1877_v5 = vpop.f32.mrf.mxu0  ;;  %v787_v11 = vpop.f32.mrf.mxu1 }
 0x138   : > { %v2711_v6 = vadd.f32 %v784_v0, %v688_v3  ;;  %v1878_v7 = vadd.f32 %v1877_v5, %v1876_v2 }
 0x139   : > { %v1879_v8 = vpop.f32.mrf.mxu0  ;;  %v2039_v20 = vpop.f32.mrf.mxu1 }
 0x13a   : > { %v847_v9 = vsub.f32 0.0, %v2711_v6  ;;  %v691_v10 = vadd.f32 %v1878_v7, %v2708_v63 }
 0x13b   : > { %v1880_v12 = vpop.f32.mrf.mxu0  ;;  %v800_v27 = vpop.f32.mrf.mxu1 }
 0x13c   : > { %v863_v13 = vmul.f32 1.442695, %v847_v9  ;;  %v2715_v14 = vadd.f32 %v787_v11, %v691_v10  ;;  %v1881_v15 = vadd.f32 %v1880_v12, %v1879_v8 }
 0x13d   : > { %v1882_v16 = vpop.f32.mrf.mxu0  ;;  %v2040_v35 = vpop.f32.mrf.mxu1 }
 0x13e   : > { %2207 = vpow2.f32 %v863_v13  ;;  %v848_v17 = vsub.f32 0.0, %v2715_v14  ;;  %v696_v18 = vadd.f32 %v1881_v15, %v2708_v63 }
 0x13f   : > { %v1883_v19 = vpop.f32.mrf.mxu0  ;;  %v803_v45 = vpop.f32.mrf.mxu1 }
 0x140   : > { %v865_v21 = vmul.f32 1.442695, %v848_v17  ;;  %v2719_v22 = vadd.f32 %v2035_v61, %v696_v18  ;;  %v1884_v23 = vadd.f32 %v1883_v19, %v1882_v16 }
 0x141   : > { %v1885_v24 = vpop.f32.mrf.mxu0  ;;  %v2043_v56 = vpop.f32.mrf.mxu1 }
 0x142   : > { %2209 = vpow2.f32 %v865_v21  ;;  %v849_v25 = vsub.f32 0.0, %v2719_v22  ;;  %v699_v26 = vadd.f32 %v1884_v23, %v2708_v63 }
 0x143   : > { %v1886_v29 = vpop.f32.mrf.mxu0  ;;  %v816_v3 = vpop.f32.mrf.mxu1 }
 0x144   : > { %v867_v30 = vmul.f32 1.442695, %v849_v25  ;;  %v2723_v31 = vadd.f32 %v2036_v4, %v699_v26  ;;  %v1887_v32 = vadd.f32 %v1886_v29, %v1885_v24 }
 0x145   : > { %v1888_v28 = vpop.f32.mrf.mxu0  ;;  %v2044_v15 = vpop.f32.mrf.mxu1 }
 0x146   : > { %2211 = vpow2.f32 %v867_v30  ;;  %v850_v33 = vsub.f32 0.0, %v2723_v31  ;;  %v704_v34 = vadd.f32 %v1887_v32, %v2708_v63 }
 0x147   : > { %v1889_v36 = vpop.f32.mrf.mxu0  ;;  %v819_v26 = vpop.f32.mrf.mxu1 }
 0x148   : > { %v869_v37 = vmul.f32 1.442695, %v850_v33  ;;  %v2727_v38 = vadd.f32 %v800_v27, %v704_v34  ;;  %v1890_v39 = vadd.f32 %v1889_v36, %v1888_v28 }
 0x149   : > { %v1891_v41 = vpop.f32.mrf.mxu0 }
 0x14a   : > { %2213 = vpow2.f32 %v869_v37  ;;  %v851_v42 = vsub.f32 0.0, %v2727_v38  ;;  %v707_v43 = vadd.f32 %v1890_v39, %v2708_v63 }
 0x14b   : > { %v2208_v44 = vpop.eup %2207  ;;  %v1892_v46 = vpop.f32.mrf.mxu0 }
 0x14c   : > { %v895_v47 = vadd.f32 1.0, %v2208_v44  ;;  %v871_v48 = vmul.f32 1.442695, %v851_v42  ;;  %v2731_v49 = vadd.f32 %v803_v45, %v707_v43  ;;  %v1893_v50 = vadd.f32 %v1892_v46, %v1891_v41  ;;  %v2752_v42 = vpop.f32.mrf.mxu1 }
 0x14d   : > { %v1894_v51 = vpop.f32.mrf.mxu0 }
 0x14e   : > { %2215 = vrcp.f32 %v895_v47  ;;  %v852_v52 = vsub.f32 0.0, %v2731_v49  ;;  %v712_v53 = vadd.f32 %v1893_v50, %v2708_v63 }
 0x14f   : > { %v2210_v54 = vpop.eup %2209  ;;  %2217 = vpow2.f32 %v871_v48  ;;  %v1895_v55 = vpop.f32.mrf.mxu0 }
 0x150   : > { %v896_v57 = vadd.f32 1.0, %v2210_v54  ;;  %v873_v58 = vmul.f32 1.442695, %v852_v52  ;;  %v2735_v59 = vadd.f32 %v2039_v20, %v712_v53  ;;  %v1896_v61 = vadd.f32 %v1895_v55, %v1894_v51 }
 0x151   : > { %v1897_v62 = vpop.f32.mrf.mxu0 }
 0x152   : > { %2219 = vrcp.f32 %v896_v57  ;;  %v853_v0 = vsub.f32 0.0, %v2735_v59  ;;  %v715_v1 = vadd.f32 %v1896_v61, %v2708_v63 }
 0x153   : > { %v2212_v2 = vpop.eup %2211  ;;  %2221 = vpow2.f32 %v873_v58  ;;  %v1898_v4 = vpop.f32.mrf.mxu0 }
 0x154   : > { %v875_v5 = vmul.f32 1.442695, %v853_v0  ;;  %v2739_v7 = vadd.f32 %v2040_v35, %v715_v1  ;;  %v1899_v8 = vadd.f32 %v1898_v4, %v1897_v62  ;;  %v897_v9 = vadd.f32 1.0, %v2212_v2 }
 0x155   : > { %v1900_v10 = vpop.f32.mrf.mxu0 }
 0x156   : > { %v854_v11 = vsub.f32 0.0, %v2739_v7  ;;  %v720_v12 = vadd.f32 %v1899_v8, %v2708_v63  ;;  %2223 = vpow2.f32 %v875_v5 }
 0x157   : > { %v2214_v13 = vpop.eup %2213  ;;  %v1901_v16 = vpop.f32.mrf.mxu0  ;;  %2225 = vrcp.f32 %v897_v9 }
 0x158   : > { %v898_v17 = vadd.f32 1.0, %v2214_v13  ;;  %v877_v18 = vmul.f32 1.442695, %v854_v11  ;;  %v2743_v19 = vadd.f32 %v816_v3, %v720_v12  ;;  %v1902_v20 = vadd.f32 %v1901_v16, %v1900_v10 }
 0x159   : > { %v1903_v21 = vpop.f32.mrf.mxu0 }
 0x15a   : > { %2227 = vrcp.f32 %v898_v17  ;;  %v855_v23 = vsub.f32 0.0, %v2743_v19  ;;  %v723_v24 = vadd.f32 %v1902_v20, %v2708_v63 }
 0x15b   : > { %v2216_v25 = vpop.eup %2215  ;;  %2229 = vpow2.f32 %v877_v18  ;;  %v1904_v27 = vpop.f32.mrf.mxu0 }
 0x15c   : > { %v2218_v29 = vpop.eup %2217  ;;  %v879_v30 = vmul.f32 1.442695, %v855_v23  ;;  %v2747_v32 = vadd.f32 %v819_v26, %v723_v24  ;;  %v1905_v28 = vadd.f32 %v1904_v27, %v1903_v21  ;;  %v927_v39 = vmul.f32 %v2216_v25, %v2711_v6  ;;  %v832_v6 = vpop.f32.mrf.mxu1 }
 0x15d   : > { %v899_v33 = vadd.f32 1.0, %v2218_v29  ;;  %v1906_v34 = vpop.f32.mrf.mxu0 }
 0x15e   : > { %2231 = vpow2.f32 %v879_v30  ;;  %v856_v35 = vsub.f32 0.0, %v2747_v32  ;;  %v728_v36 = vadd.f32 %v1905_v28, %v2708_v63  ;;  %v2048_v8 = vpop.f32.mrf.mxu1 }
 0x15f   : > { %v2220_v37 = vpop.eup %2219  ;;  %v1907_v41 = vpop.f32.mrf.mxu0  ;;  %2233 = vrcp.f32 %v899_v33 }
 0x160   : > { %v2222_v43 = vpop.eup %2221  ;;  %v928_v44 = vmul.f32 %v2220_v37, %v2715_v14  ;;  %v881_v45 = vmul.f32 1.442695, %v856_v35  ;;  %v2755_v46 = vadd.f32 %v2043_v56, %v728_v36  ;;  %v1908_v47 = vadd.f32 %v1907_v41, %v1906_v34  ;;  %v835_v26 = vpop.f32.mrf.mxu1 }
 0x161   : > { %v900_v48 = vadd.f32 1.0, %v2222_v43  ;;  %v1909_v50 = vpop.f32.mrf.mxu0 }
 0x162   : > { %2235 = vpow2.f32 %v881_v45  ;;  %v857_v51 = vsub.f32 0.0, %v2755_v46  ;;  %v731_v52 = vadd.f32 %v1908_v47, %v2708_v63  ;;  %v943_v53 = vpack.c.bf16 %v928_v44, %v927_v39 }
 0x163   : > { %2237 = vrcp.f32 %v900_v48  ;;  %v1910_v54 = vpop.f32.mrf.mxu0  ;;  %v2224_v55 = vpop.eup %2223 }
 0x164   : > { %v883_v57 = vmul.f32 1.442695, %v857_v51  ;;  %v2759_v58 = vadd.f32 %v2044_v15, %v731_v52  ;;  %v1911_v14 = vadd.f32 %v1910_v54, %v1909_v50  ;;  %v952_v56 = vshrl.u32 %v943_v53, 16  ;;  %1286 = vmatprep.mubr.bf16.mxu1 %v943_v53  ;;  %v2226_v1 = vpop.eup %2225 }
 0x165   : > { %v901_v61 = vadd.f32 1.0, %v2224_v55  ;;  %v955_v62 = vshll.u32 %v943_v53, 16  ;;  %v1912_v0 = vpop.f32.mrf.mxu0  ;;  %v929_v18 = vmul.f32 %v2226_v1, %v2719_v22 }
 0x166   : > { %2239 = vpow2.f32 %v883_v57  ;;  %v858_v2 = vsub.f32 0.0, %v2759_v58  ;;  %v736_v3 = vadd.f32 %v1911_v14, %v2708_v63  ;;  %v954_v4 = vrot.slane %v952_v56, 7 }
 0x167   : > { %v2228_v5 = vpop.eup %2227  ;;  %v1913_v9 = vpop.f32.mrf.mxu0  ;;  %2241 = vrcp.f32 %v901_v61  ;;  %v1023_v30 = vrot.slane %v955_v62, 1 }
 0x168   : > { %v2230_v10 = vpop.eup %2229  ;;  %v885_v11 = vmul.f32 1.442695, %v858_v2  ;;  %v2763_v12 = vadd.f32 %v832_v6, %v736_v3  ;;  %v1914_v13 = vadd.f32 %v1913_v9, %v1912_v0  ;;  %v957_v15 = vor.u32 %v955_v62, %v954_v4 }
 0x169   : > { %v902_v16 = vadd.f32 1.0, %v2230_v10  ;;  %v1915_v17 = vpop.f32.mrf.mxu0  ;;  %v930_v20 = vmul.f32 %v2228_v5, %v2723_v31  ;;  %v1024_v45 = vor.u32 %v1023_v30, %v952_v56 }
 0x16a   : > { %2243 = vpow2.f32 %v885_v11  ;;  %v859_v21 = vsub.f32 0.0, %v2763_v12  ;;  %v739_v23 = vadd.f32 %v1914_v13, %v2708_v63  ;;  %v1021_v24 = vsel %vm2650_vm3, 0, %v957_v15 }
 0x16b   : > { %v2232_v25 = vpop.eup %2231  ;;  %2245 = vrcp.f32 %v902_v16  ;;  %v1916_v27 = vpop.f32.mrf.mxu0  ;;  %1287 = vmatmul.mubr.bf16.vlgmr.msra.gmra.mxu1 %v1021_v24  ;;  %v944_v29 = vpack.c.bf16 %v930_v20, %v929_v18 }
 0x16c   : > { %v903_v28 = vadd.f32 1.0, %v2232_v25  ;;  %v887_v33 = vmul.f32 1.442695, %v859_v21  ;;  %v2771_v22 = vadd.f32 %v835_v26, %v739_v23  ;;  %v1917_v31 = vadd.f32 %v1916_v27, %v1915_v17  ;;  %v2234_v37 = vpop.eup %2233 }
 0x16d   : > { %v959_v34 = vshrl.u32 %v944_v29, 16  ;;  %1294 = vmatprep.mubr.bf16.mxu1 %v944_v29  ;;  %v1918_v35 = vpop.f32.mrf.mxu0  ;;  %v962_v36 = vshll.u32 %v944_v29, 16  ;;  %v931_v57 = vmul.f32 %v2234_v37, %v2727_v38 }
 0x16e   : > { %2247 = vrcp.f32 %v903_v28  ;;  %v860_v39 = vsub.f32 0.0, %v2771_v22  ;;  %v744_v41 = vadd.f32 %v1917_v31, %v2708_v63 }
 0x16f   : > { %v2236_v43 = vpop.eup %2235  ;;  %2249 = vpow2.f32 %v887_v33  ;;  %v1919_v44 = vpop.f32.mrf.mxu0  ;;  %v1025_v47 = vrot.slane %v962_v36, 1  ;;  %v961_v48 = vrot.slane %v959_v34, 7 }
 0x170   : > { %v2238_v50 = vpop.eup %2237  ;;  %v904_v51 = vadd.f32 1.0, %v2236_v43  ;;  %v889_v52 = vmul.f32 1.442695, %v860_v39  ;;  %v2776_v53 = vadd.f32 %v2752_v42, %v744_v41  ;;  %v1920_v6 = vadd.f32 %v1919_v44, %v1918_v35 }
 0x171   : > { %v1026_v54 = vsel %vm411_vm0, %v1024_v45, %v1025_v47  ;;  %v964_v55 = vor.u32 %v962_v36, %v961_v48  ;;  %v932_v14 = vmul.f32 %v2238_v50, %v2731_v49 }
 0x172   : > { %2251 = vrcp.f32 %v904_v51  ;;  %v861_v61 = vsub.f32 0.0, %v2776_v53  ;;  %v747_v56 = vadd.f32 %v1920_v6, %v2708_v63  ;;  %2065 = vmatprep.mubr.bf16.mxu0 %v1026_v54  ;;  %v1027_v63 = vor.u32 %v1025_v47, %v959_v34 }
 0x173   : > { %v2240_v62 = vpop.eup %2239  ;;  %2253 = vpow2.f32 %v889_v52  ;;  %v965_v0 = vsel %vm336_vm1, %v954_v4, %v964_v55  ;;  %v945_v42 = vpack.c.bf16 %v932_v14, %v931_v57 }
 0x174   : > { %v905_v1 = vadd.f32 1.0, %v2240_v62  ;;  %v891_v2 = vmul.f32 1.442695, %v861_v61  ;;  %v2784_v3 = vadd.f32 %v2048_v8, %v747_v56  ;;  %1295 = vmatmul.mubr.bf16.gmra.mxu1 %v965_v0  ;;  %v2242_v49 = vpop.eup %2241 }
 0x175   : > { %v967_v5 = vshrl.u32 %v945_v42, 16  ;;  %v970_v38 = vshll.u32 %v945_v42, 16  ;;  %1302 = vmatprep.mubr.bf16.mxu1 %v945_v42  ;;  %v933_v18 = vmul.f32 %v2242_v49, %v2735_v59 }
 0x176   : > { %v862_v9 = vsub.f32 0.0, %v2784_v3  ;;  %2255 = vpow2.f32 %v891_v2 }
 0x177   : > { %v2244_v10 = vpop.eup %2243  ;;  %v1028_v11 = vrot.slane %v970_v38, 1  ;;  %v969_v13 = vrot.slane %v967_v5, 7  ;;  %2257 = vrcp.f32 %v905_v1 }
 0x178   : > { %v2246_v15 = vpop.eup %2245  ;;  %v906_v4 = vadd.f32 1.0, %v2244_v10  ;;  %v893_v16 = vmul.f32 1.442695, %v862_v9 }
 0x179   : > { %v1029_v17 = vsel %vm411_vm0, %v1027_v63, %v1028_v11  ;;  %v972_v8 = vor.u32 %v970_v38, %v969_v13  ;;  %v934_v20 = vmul.f32 %v2246_v15, %v2739_v7  ;;  %v1030_v28 = vor.u32 %v1028_v11, %v967_v5 }
 0x17a   : > { %2259 = vrcp.f32 %v906_v4  ;;  %2066 = vmatmul.mubr.bf16.vlgmr.msra.gmra.mxu0 %v1029_v17 }
 0x17b   : > { %v2248_v21 = vpop.eup %2247  ;;  %2261 = vpow2.f32 %v893_v16  ;;  %v973_v23 = vsel %vm336_vm1, %v961_v48, %v972_v8  ;;  %v946_v24 = vpack.c.bf16 %v934_v20, %v933_v18 }
 0x17c   : > { %v2250_v25 = vpop.eup %2249  ;;  %1303 = vmatmul.mubr.bf16.gmra.mxu1 %v973_v23  ;;  %v935_v7 = vmul.f32 %v2248_v21, %v2743_v19 }
 0x17d   : > { %v907_v26 = vadd.f32 1.0, %v2250_v25  ;;  %v975_v27 = vshrl.u32 %v946_v24, 16  ;;  %1310 = vmatprep.mubr.bf16.mxu1 %v946_v24  ;;  %v978_v29 = vshll.u32 %v946_v24, 16 }
 0x17f   : > { %v2252_v30 = vpop.eup %2251  ;;  %v1031_v33 = vrot.slane %v978_v29, 1  ;;  %v977_v31 = vrot.slane %v975_v27, 7  ;;  %2263 = vrcp.f32 %v907_v26 }
 0x180   : > { %v2254_v59 = vpop.eup %2253  ;;  %v936_v34 = vmul.f32 %v2252_v30, %v2747_v32 }
 0x181   : > { %v908_v35 = vadd.f32 1.0, %v2254_v59  ;;  %v1032_v36 = vsel %vm411_vm0, %v1030_v28, %v1031_v33  ;;  %v980_v37 = vor.u32 %v978_v29, %v977_v31  ;;  %v1033_v39 = vor.u32 %v1031_v33, %v975_v27 }
 0x182   : > { %2069 = vmatprep.mubr.bf16.mxu0 %v1032_v36  ;;  %v947_v41 = vpack.c.bf16 %v936_v34, %v935_v7 }
 0x183   : > { %2265 = vrcp.f32 %v908_v35  ;;  %v981_v43 = vsel %vm336_vm1, %v969_v13, %v980_v37  ;;  %v1053_v44 = vsel %vm2673_vm5, %v1033_v39, 0  ;;  %v2256_v45 = vpop.eup %2255 }
 0x184   : > { %1311 = vmatmul.mubr.bf16.gmra.mxu1 %v981_v43  ;;  %2070 = vmatmul.mubr.bf16.gmra.mxu0 %v1053_v44  ;;  %v983_v47 = vshrl.u32 %v947_v41, 16  ;;  %v2258_v19 = vpop.eup %2257  ;;  %v909_v48 = vadd.f32 1.0, %v2256_v45  ;;  %v986_v50 = vshll.u32 %v947_v41, 16 }
 0x185   : > { %1318 = vmatprep.mubr.bf16.mxu1 %v947_v41  ;;  %v937_v54 = vmul.f32 %v2258_v19, %v2755_v46  ;;  %v2816_v41 = vld [vmem:[%s2965_s4] ss:$0 sm:$0xff] }
 0x186   : > { %v985_v32 = vrot.slane %v983_v47, 7  ;;  %2267 = vrcp.f32 %v909_v48  ;;  %v1034_v61 = vrot.slane %v986_v50, 1 }
 0x187   : > { %v2260_v51 = vpop.eup %2259 }
 0x188   : > { %v2262_v52 = vpop.eup %2261  ;;  %v988_v6 = vor.u32 %v986_v50, %v985_v32  ;;  %v938_v55 = vmul.f32 %v2260_v51, %v2759_v58  ;;  %v1035_v1 = vor.u32 %v1034_v61, %v983_v47 }
 0x189   : > { %v910_v57 = vadd.f32 1.0, %v2262_v52 }
 0x18a   : > { %v1022_v14 = vsel %vm2650_vm3, 0, %v988_v6  ;;  %v948_v56 = vpack.c.bf16 %v938_v55, %v937_v54 }
 0x18b   : > { %2269 = vrcp.f32 %v910_v57 }
 0x18c   : > { %1319 = vmatmul.mubr.bf16.gmra.mxu1 %v1022_v14  ;;  %v990_v62 = vshrl.u32 %v948_v56, 16  ;;  %v993_v0 = vshll.u32 %v948_v56, 16  ;;  %v2264_v42 = vpop.eup %2263 }
 0x18d   : > { %1326 = vmatprep.mubr.bf16.mxu1 %v948_v56  ;;  %v939_v49 = vmul.f32 %v2264_v42, %v2763_v12 }
 0x18e   : > { %v1036_v2 = vrot.slane %v993_v0, 1  ;;  %v992_v5 = vrot.slane %v990_v62, 7 }
 0x190   : > { %v2266_v38 = vpop.eup %2265  ;;  %v1037_v46 = vsel %vm411_vm0, %v1035_v1, %v1036_v2  ;;  %v995_v58 = vor.u32 %v993_v0, %v992_v5  ;;  %v1038_v15 = vor.u32 %v1036_v2, %v990_v62 }
 0x191   : > { %2073 = vmatprep.mubr.bf16.mxu0 %v1037_v46  ;;  %v940_v40 = vmul.f32 %v2266_v38, %v2771_v22 }
 0x192   : > { %v996_v9 = vsel %vm336_vm1, %v985_v32, %v995_v58 }
 0x193   : > { %v949_v10 = vpack.c.bf16 %v940_v40, %v939_v49  ;;  %v2268_v13 = vpop.eup %2267 }
 0x194   : > { %1327 = vmatmul.mubr.bf16.gmra.mxu1 %v996_v9  ;;  %v941_v20 = vmul.f32 %v2268_v13, %v2776_v53 }
 0x195   : > { %v998_v63 = vshrl.u32 %v949_v10, 16  ;;  %1334 = vmatprep.mubr.bf16.mxu1 %v949_v10  ;;  %v1001_v11 = vshll.u32 %v949_v10, 16 }
 0x197   : > { %v1039_v4 = vrot.slane %v1001_v11, 1  ;;  %v1000_v16 = vrot.slane %v998_v63, 7 }
 0x198   : > { %v2270_v17 = vpop.eup %2269 }
 0x199   : > { %v1040_v8 = vsel %vm411_vm0, %v1038_v15, %v1039_v4  ;;  %v1003_v18 = vor.u32 %v1001_v11, %v1000_v16  ;;  %v942_v12 = vmul.f32 %v2270_v17, %v2784_v3  ;;  %v1041_v25 = vor.u32 %v1039_v4, %v998_v63 }
 0x19a   : > { %2074 = vmatmul.mubr.bf16.gmra.mxu0 %v1040_v8 }
 0x19b   : > { %v1004_v22 = vsel %vm336_vm1, %v992_v5, %v1003_v18  ;;  %v950_v21 = vpack.c.bf16 %v942_v12, %v941_v20 }
 0x19c   : > { %1335 = vmatmul.mubr.bf16.gmra.mxu1 %v1004_v22 }
 0x19d   : > { %v1006_v23 = vshrl.u32 %v950_v21, 16  ;;  %1342 = vmatprep.mubr.bf16.mxu1 %v950_v21  ;;  %v1009_v24 = vshll.u32 %v950_v21, 16 }
 0x19f   : > { %v1042_v26 = vrot.slane %v1009_v24, 1  ;;  %v1008_v27 = vrot.slane %v1006_v23, 7 }
 0x1a1   : > { %v1043_v29 = vsel %vm411_vm0, %v1041_v25, %v1042_v26  ;;  %v1011_v30 = vor.u32 %v1009_v24, %v1008_v27  ;;  %v1044_v28 = vor.u32 %v1042_v26, %v1006_v23 }
 0x1a2   : > { %2077 = vmatprep.mubr.bf16.mxu0 %v1043_v29 }
 0x1a3   : > { %v1012_v53 = vsel %vm336_vm1, %v1000_v16, %v1011_v30  ;;  %v1054_v3 = vsel %vm2673_vm5, %v1044_v28, 0 }
 0x1a4   : > { %1343 = vmatmul.mubr.bf16.gmra.mxu1 %v1012_v53  ;;  %2078 = vmatmul.mubr.bf16.gmra.mxu0 %v1054_v3 }
 0x22b   : > { %v1953_v33 = vpop.f32.mrf.mxu1 }
 0x22d   : > { %v1954_v31 = vpop.f32.mrf.mxu1 }
 0x22e   : > { %v1955_v36 = vadd.f32 %v1954_v31, %v1953_v33 }
 0x22f   : > { %v1956_v59 = vpop.f32.mrf.mxu1 }
 0x230   : > { %v1289_v48 = vadd.f32 %v1955_v36, %v2816_v41 }
 0x231   : > { %v1957_v7 = vpop.f32.mrf.mxu1 }
 0x232   : > { %v1958_v45 = vadd.f32 %v1957_v7, %v1956_v59 }
 0x234   : > { %v1959_v34 = vpop.f32.mrf.mxu1  ;;  %v1292_v56 = vadd.f32 %v1958_v45, %v2816_v41 }
 0x236   : > { %v1960_v35 = vpop.f32.mrf.mxu1 }
 0x237   : > { %v1961_v37 = vadd.f32 %v1960_v35, %v1959_v34 }
 0x238   : > { %v1962_v39 = vpop.f32.mrf.mxu1 }
 0x239   : > { %v1297_v43 = vadd.f32 %v1961_v37, %v2816_v41 }
 0x23a   : > { %v1963_v60 = vpop.f32.mrf.mxu1  ;;  %v2067_v44 = vpop.f32.mrf.mxu0 }
 0x23b   : > { %v1964_v47 = vadd.f32 %v1963_v60, %v1962_v39  ;;  %v2819_v19 = vadd.f32 %v2067_v44, %v1297_v43 }
 0x23c   : > { %v1965_v32 = vpop.f32.mrf.mxu1  ;;  %v1385_v50 = vpop.f32.mrf.mxu0 }
 0x23d   : > { %v1450_v51 = vsub.f32 0.0, %v2819_v19  ;;  %v2823_v52 = vadd.f32 %v1385_v50, %v1289_v48  ;;  %v1300_v6 = vadd.f32 %v1964_v47, %v2816_v41 }
 0x23e   : > { %v1966_v54 = vpop.f32.mrf.mxu1  ;;  %v2068_v55 = vpop.f32.mrf.mxu0 }
 0x23f   : > { %v1468_v57 = vmul.f32 1.442695, %v1450_v51  ;;  %v1448_v14 = vsub.f32 0.0, %v2823_v52  ;;  %v2827_v61 = vadd.f32 %v2068_v55, %v1300_v6  ;;  %v1967_v62 = vadd.f32 %v1966_v54, %v1965_v32 }
 0x240   : > { %v1968_v0 = vpop.f32.mrf.mxu1  ;;  %v1388_v42 = vpop.f32.mrf.mxu0 }
 0x241   : > { %2271 = vpow2.f32 %v1468_v57  ;;  %v1464_v1 = vmul.f32 1.442695, %v1448_v14  ;;  %v1451_v2 = vsub.f32 0.0, %v2827_v61  ;;  %v2831_v5 = vadd.f32 %v1388_v42, %v1292_v56  ;;  %v2335_v42 = vld [vmem:[%s2621_s16 + $0x8] sm:$0xff]  }
 0x242   : > { %v1969_v38 = vpop.f32.mrf.mxu1  ;;  %v1305_v63 = vadd.f32 %v1967_v62, %v2816_v41 }
 0x243   : > { %2273 = vpow2.f32 %v1464_v1  ;;  %v1470_v46 = vmul.f32 1.442695, %v1451_v2  ;;  %v1449_v58 = vsub.f32 0.0, %v2831_v5  ;;  %v1970_v10 = vadd.f32 %v1969_v38, %v1968_v0 }
 0x244   : > { %v1971_v49 = vpop.f32.mrf.mxu1  ;;  %v2071_v40 = vpop.f32.mrf.mxu0  ;;  %v1546_v1 = vunpack.c.l.bf16 %v2335_v42 }
 0x245   : > { %2275 = vpow2.f32 %v1470_v46  ;;  %v1466_v9 = vmul.f32 1.442695, %v1449_v58  ;;  %v1308_v20 = vadd.f32 %v1970_v10, %v2816_v41  ;;  %v2336_v10 = vld [vmem:[%s2621_s16] sm:$0xff]  }
 0x246   : > { %v1972_v11 = vpop.f32.mrf.mxu1  ;;  %v1401_v13 = vpop.f32.mrf.mxu0 }
 0x247   : > { %2277 = vpow2.f32 %v1466_v9  ;;  %v1973_v15 = vadd.f32 %v1972_v11, %v1971_v49  ;;  %v2835_v4 = vadd.f32 %v1401_v13, %v1305_v63  ;;  %v1544_v63 = vunpack.c.l.bf16 %v2336_v10 }
 0x248   : > { %v1974_v16 = vpop.f32.mrf.mxu1  ;;  %v2072_v17 = vpop.f32.mrf.mxu0  ;;  %v1545_v11 = vunpack.c.h.bf16 %v2336_v10 }
 0x249   : > { %v1313_v8 = vadd.f32 %v1973_v15, %v2816_v41  ;;  %v1452_v18 = vsub.f32 0.0, %v2835_v4 }
 0x24a   : > { %v1975_v12 = vpop.f32.mrf.mxu1  ;;  %v1404_v22 = vpop.f32.mrf.mxu0 }
 0x24b   : > { %v2840_v21 = vadd.f32 %v2071_v40, %v1313_v8  ;;  %v1472_v23 = vmul.f32 1.442695, %v1452_v18  ;;  %v1976_v24 = vadd.f32 %v1975_v12, %v1974_v16  ;;  %v2842_v25 = vadd.f32 %v1404_v22, %v1308_v20 }
 0x24c   : > { %v1977_v26 = vpop.f32.mrf.mxu1  ;;  %v1547_v8 = vunpack.c.h.bf16 %v2335_v42 }
 0x24d   : > { %v1454_v27 = vsub.f32 0.0, %v2840_v21  ;;  %2279 = vpow2.f32 %v1472_v23  ;;  %v1316_v29 = vadd.f32 %v1976_v24, %v2816_v41  ;;  %v1453_v30 = vsub.f32 0.0, %v2842_v25 }
 0x24e   : > { %v2272_v28 = vpop.eup %2271  ;;  %v1978_v53 = vpop.f32.mrf.mxu1 }
 0x24f   : > { %v1498_v3 = vadd.f32 1.0, %v2272_v28  ;;  %v1476_v33 = vmul.f32 1.442695, %v1454_v27  ;;  %v2847_v31 = vadd.f32 %v2072_v17, %v1316_v29  ;;  %v1474_v7 = vmul.f32 1.442695, %v1453_v30 }
 0x250   : > { %v2274_v59 = vpop.eup %2273  ;;  %v1980_v34 = vpop.f32.mrf.mxu1  ;;  %v1979_v32 = vadd.f32 %v1978_v53, %v1977_v26 }
 0x251   : > { %2281 = vrcp.f32 %v1498_v3  ;;  %v1496_v35 = vadd.f32 1.0, %v2274_v59  ;;  %v1455_v36 = vsub.f32 0.0, %v2847_v31 }
 0x252   : > { %v2276_v37 = vpop.eup %2275  ;;  %2283 = vpow2.f32 %v1476_v33  ;;  %v1981_v39 = vpop.f32.mrf.mxu1  ;;  %v1321_v0 = vadd.f32 %v1979_v32, %v2816_v41 }
 0x253   : > { %2285 = vrcp.f32 %v1496_v35  ;;  %v1499_v43 = vadd.f32 1.0, %v2276_v37  ;;  %v1478_v60 = vmul.f32 1.442695, %v1455_v36  ;;  %v1982_v2 = vadd.f32 %v1981_v39, %v1980_v34 }
 0x254   : > { %v2278_v44 = vpop.eup %2277  ;;  %2287 = vpow2.f32 %v1474_v7  ;;  %v1983_v45 = vpop.f32.mrf.mxu1 }
 0x255   : > { %2289 = vrcp.f32 %v1499_v43  ;;  %v1497_v47 = vadd.f32 1.0, %v2278_v44  ;;  %v1324_v27 = vadd.f32 %v1982_v2, %v2816_v41  ;;  %v2337_v2 = vld [vmem:[%s2621_s16 + $0x10] sm:$0xff]  }
 0x256   : > { %2291 = vpow2.f32 %v1478_v60  ;;  %v1984_v48 = vpop.f32.mrf.mxu1 }
 0x257   : > { %2293 = vrcp.f32 %v1497_v47  ;;  %v1985_v50 = vadd.f32 %v1984_v48, %v1983_v45 }
 0x258   : > { %v1986_v51 = vpop.f32.mrf.mxu1 }
 0x259   : > { %v1329_v6 = vadd.f32 %v1985_v50, %v2816_v41 }
 0x25a   : > { %v2280_v54 = vpop.eup %2279  ;;  %v1987_v55 = vpop.f32.mrf.mxu1 }
 0x25b   : > { %v2075_v57 = vpop.f32.mrf.mxu0  ;;  %v1500_v14 = vadd.f32 1.0, %v2280_v54  ;;  %v1988_v56 = vadd.f32 %v1987_v55, %v1986_v51 }
 0x25c   : > { %v2855_v62 = vadd.f32 %v2075_v57, %v1329_v6  ;;  %v1989_v38 = vpop.f32.mrf.mxu1 }
 0x25d   : > { %v1417_v46 = vpop.f32.mrf.mxu0  ;;  %2295 = vrcp.f32 %v1500_v14  ;;  %v1332_v40 = vadd.f32 %v1988_v56, %v2816_v41 }
 0x25e   : > { %v1458_v58 = vsub.f32 0.0, %v2855_v62  ;;  %v2860_v49 = vadd.f32 %v1417_v46, %v1321_v0  ;;  %v2282_v9 = vpop.eup %2281  ;;  %v1990_v13 = vpop.f32.mrf.mxu1 }
 0x25f   : > { %v2076_v15 = vpop.f32.mrf.mxu0  ;;  %v2284_v16 = vpop.eup %2283  ;;  %v1530_v17 = vmul.f32 %v2282_v9, %v2819_v19  ;;  %v1991_v23 = vadd.f32 %v1990_v13, %v1989_v38  ;;  %v1548_v38 = vunpack.c.l.bf16 %v2337_v2 }
 0x260   : > { %v1484_v18 = vmul.f32 1.442695, %v1458_v58  ;;  %v1456_v20 = vsub.f32 0.0, %v2860_v49  ;;  %v2286_v12 = vpop.eup %2285  ;;  %v1502_v22 = vadd.f32 1.0, %v2284_v16  ;;  %v2867_v24 = vadd.f32 %v2076_v15, %v1332_v40  ;;  %v1992_v26 = vpop.f32.mrf.mxu1 }
 0x261   : > { %v1420_v29 = vpop.f32.mrf.mxu0  ;;  %v2288_v30 = vpop.eup %2287  ;;  %v1562_v28 = vadd.f32 %v1546_v1, %v1530_v17  ;;  %v1528_v53 = vmul.f32 %v2286_v12, %v2823_v52  ;;  %v1337_v54 = vadd.f32 %v1991_v23, %v2816_v41  ;;  %v2338_v23 = vld [vmem:[%s2621_s16 + $0x18] sm:$0xff]  }
 0x262   : > { %2297 = vpow2.f32 %v1484_v18  ;;  %v1480_v3 = vmul.f32 1.442695, %v1456_v20  ;;  %v2290_v19 = vpop.eup %2289  ;;  %v1501_v33 = vadd.f32 1.0, %v2288_v30  ;;  %v1459_v59 = vsub.f32 0.0, %v2867_v24  ;;  %v1993_v34 = vpop.f32.mrf.mxu1 }
 0x263   : > { %2299 = vrcp.f32 %v1502_v22  ;;  %v2877_v7 = vadd.f32 %v1420_v29, %v1324_v27  ;;  %v2292_v35 = vpop.eup %2291  ;;  %v1843_v36 = vpack.c.bf16 %v1562_v28, %v1562_v28  ;;  %v1560_v37 = vadd.f32 %v1544_v63, %v1528_v53 }
 0x264   : > { %v1531_v52 = vmul.f32 %v2290_v19, %v2827_v61  ;;  %2301 = vpow2.f32 %v1480_v3  ;;  %v2294_v39 = vpop.eup %2293  ;;  %v1503_v43 = vadd.f32 1.0, %v2292_v35  ;;  %v1486_v60 = vmul.f32 1.442695, %v1459_v59  ;;  %v1995_v45 = vpop.f32.mrf.mxu1 }
 0x265   : > { %2303 = vrcp.f32 %v1501_v33  ;;  %v1457_v44 = vsub.f32 0.0, %v2877_v7  ;;  %v2079_v47 = vpop.f32.mrf.mxu0  ;;  %1643 = vst.msk [vmem:[%s2874_s9 + $0x8] sm:$0xf] %vm1640_vm6, %v1843_v36  ;;  %v1841_v48 = vpack.c.bf16 %v1560_v37, %v1560_v37  ;;  %v1529_v50 = vmul.f32 %v2294_v39, %v2831_v5 }
 0x266   : > { %v1563_v32 = vadd.f32 %v1547_v8, %v1531_v52  ;;  %v1994_v51 = vadd.f32 %v1993_v34, %v1992_v26  ;;  %2305 = vrcp.f32 %v1503_v43  ;;  %v1996_v6 = vpop.f32.mrf.mxu1  ;;  %v1550_v26 = vunpack.c.l.bf16 %v2338_v23 }
 0x267   : > { %v1482_v61 = vmul.f32 1.442695, %v1457_v44  ;;  %v1433_v55 = vpop.f32.mrf.mxu0  ;;  %1641 = vst.msk [vmem:[%s2874_s9] sm:$0xf] %vm1640_vm6, %v1841_v48  ;;  %v1561_v14 = vadd.f32 %v1545_v11, %v1529_v50  ;;  %2307 = vpow2.f32 %v1486_v60  ;;  %v1997_v56 = vadd.f32 %v1996_v6, %v1995_v45 }
 0x268   : > { %v1844_v57 = vpack.c.bf16 %v1563_v32, %v1563_v32  ;;  %v2887_v0 = vadd.f32 %v1433_v55, %v1337_v54  ;;  %v1998_v5 = vpop.f32.mrf.mxu1  ;;  %v1340_v58 = vadd.f32 %v1994_v51, %v2816_v41  ;;  %v1549_v19 = vunpack.c.h.bf16 %v2337_v2 }
 0x269   : > { %2309 = vpow2.f32 %v1482_v61  ;;  %v2080_v42 = vpop.f32.mrf.mxu0  ;;  %v1842_v1 = vpack.c.bf16 %v1561_v14, %v1561_v14  ;;  %v1345_v46 = vadd.f32 %v1997_v56, %v2816_v41  ;;  %v1551_v36 = vunpack.c.h.bf16 %v2338_v23  ;;  %v2339_v61 = vld [vmem:[%s2621_s16 + $0x28] sm:$0xff]   ;;  %v2340_v14 = vld [vmem:[%s2621_s16 + $0x20] sm:$0xff]   ;;  %v2341_v23 = vld [vmem:[%s2621_s16 + $0x30] sm:$0xff]  }
 0x26a   : > { %1644 = vst.msk [vmem:[%s2874_s9 + $0xc] sm:$0xf] %vm1640_vm6, %v1844_v57  ;;  %v2296_v40 = vpop.eup %2295  ;;  %v1460_v9 = vsub.f32 0.0, %v2887_v0  ;;  %v1999_v10 = vpop.f32.mrf.mxu1  ;;  %v1554_v6 = vunpack.c.l.bf16 %v2339_v61  ;;  %v1552_v56 = vunpack.c.l.bf16 %v2340_v14 }
 0x26b   : > { %v1436_v63 = vpop.f32.mrf.mxu0  ;;  %1642 = vst.msk [vmem:[%s2874_s9 + $0x4] sm:$0xf] %vm1640_vm6, %v1842_v1  ;;  %v1532_v11 = vmul.f32 %v2296_v40, %v2835_v4  ;;  %v2898_v13 = vadd.f32 %v2079_v47, %v1345_v46  ;;  %v2000_v15 = vadd.f32 %v1999_v10, %v1998_v5  ;;  %v1555_v10 = vunpack.c.h.bf16 %v2339_v61 }
 0x26c   : > { %v2900_v16 = vadd.f32 %v1436_v63, %v1340_v58  ;;  %v1488_v17 = vmul.f32 1.442695, %v1460_v9 }
 0x26d   : > { %v1564_v8 = vadd.f32 %v1548_v38, %v1532_v11  ;;  %v1462_v18 = vsub.f32 0.0, %v2898_v13  ;;  %v1348_v20 = vadd.f32 %v2000_v15, %v2816_v41 }
 0x26e   : > { %v1461_v12 = vsub.f32 0.0, %v2900_v16  ;;  %2311 = vpow2.f32 %v1488_v17 }
 0x26f   : > { %v2298_v22 = vpop.eup %2297  ;;  %v1845_v4 = vpack.c.bf16 %v1564_v8, %v1564_v8  ;;  %v1492_v30 = vmul.f32 1.442695, %v1462_v18  ;;  %v2906_v28 = vadd.f32 %v2080_v42, %v1348_v20 }
 0x270   : > { %v2300_v27 = vpop.eup %2299  ;;  %v1506_v29 = vadd.f32 1.0, %v2298_v22  ;;  %v1490_v33 = vmul.f32 1.442695, %v1461_v12 }
 0x271   : > { %v2302_v53 = vpop.eup %2301  ;;  %v1534_v3 = vmul.f32 %v2300_v27, %v2840_v21  ;;  %1645 = vst.msk [vmem:[%s2874_s9 + $0x10] sm:$0xf] %vm1640_vm6, %v1845_v4  ;;  %v1463_v34 = vsub.f32 0.0, %v2906_v28 }
 0x272   : > { %v2304_v59 = vpop.eup %2303  ;;  %2313 = vrcp.f32 %v1506_v29  ;;  %v1504_v41 = vadd.f32 1.0, %v2302_v53 }
 0x273   : > { %v1566_v35 = vadd.f32 %v1550_v26, %v1534_v3  ;;  %v1533_v37 = vmul.f32 %v2304_v59, %v2842_v25  ;;  %2315 = vpow2.f32 %v1492_v30  ;;  %v2306_v52 = vpop.eup %2305  ;;  %v1494_v39 = vmul.f32 1.442695, %v1463_v34 }
 0x274   : > { %2317 = vrcp.f32 %v1504_v41  ;;  %v2308_v21 = vpop.eup %2307  ;;  %v1535_v60 = vmul.f32 %v2306_v52, %v2847_v31  ;;  %v1556_v26 = vunpack.c.l.bf16 %v2341_v23 }
 0x275   : > { %v1847_v43 = vpack.c.bf16 %v1566_v35, %v1566_v35  ;;  %v1565_v44 = vadd.f32 %v1549_v19, %v1533_v37  ;;  %2319 = vpow2.f32 %v1490_v33  ;;  %v1507_v47 = vadd.f32 1.0, %v2308_v21 }
 0x276   : > { %v2310_v45 = vpop.eup %2309  ;;  %2321 = vpow2.f32 %v1494_v39  ;;  %v1567_v48 = vadd.f32 %v1551_v36, %v1535_v60  ;;  %v1557_v19 = vunpack.c.h.bf16 %v2341_v23 }
 0x277   : > { %1647 = vst.msk [vmem:[%s2874_s9 + $0x18] sm:$0xf] %vm1640_vm6, %v1847_v43  ;;  %v1846_v25 = vpack.c.bf16 %v1565_v44, %v1565_v44  ;;  %v1505_v32 = vadd.f32 1.0, %v2310_v45  ;;  %2323 = vrcp.f32 %v1507_v47 }
 0x278   : > { %v1848_v50 = vpack.c.bf16 %v1567_v48, %v1567_v48 }
 0x279   : > { %1646 = vst.msk [vmem:[%s2874_s9 + $0x14] sm:$0xf] %vm1640_vm6, %v1846_v25  ;;  %2325 = vrcp.f32 %v1505_v32 }
 0x27a   : > { %1648 = vst.msk [vmem:[%s2874_s9 + $0x1c] sm:$0xf] %vm1640_vm6, %v1848_v50 }
 0x27b   : > { %v2312_v31 = vpop.eup %2311 }
 0x27c   : > { %v1508_v51 = vadd.f32 1.0, %v2312_v31 }
 0x27e   : > { %2327 = vrcp.f32 %v1508_v51 }
 0x27f   : > { %v2314_v54 = vpop.eup %2313 }
 0x280   : > { %v2316_v55 = vpop.eup %2315  ;;  %v1538_v57 = vmul.f32 %v2314_v54, %v2855_v62  ;;  %v1553_v62 = vunpack.c.h.bf16 %v2340_v14 }
 0x281   : > { %v2318_v5 = vpop.eup %2317  ;;  %v1510_v42 = vadd.f32 1.0, %v2316_v55 }
 0x282   : > { %v2320_v1 = vpop.eup %2319  ;;  %v1570_v2 = vadd.f32 %v1554_v6, %v1538_v57  ;;  %v1536_v38 = vmul.f32 %v2318_v5, %v2860_v49 }
 0x283   : > { %v2322_v46 = vpop.eup %2321  ;;  %2329 = vrcp.f32 %v1510_v42  ;;  %v1509_v58 = vadd.f32 1.0, %v2320_v1 }
 0x284   : > { %v1851_v40 = vpack.c.bf16 %v1570_v2, %v1570_v2  ;;  %v1568_v9 = vadd.f32 %v1552_v56, %v1536_v38  ;;  %v1511_v63 = vadd.f32 1.0, %v2322_v46  ;;  %v2324_v11 = vpop.eup %2323 }
 0x285   : > { %2331 = vrcp.f32 %v1509_v58  ;;  %v1539_v49 = vmul.f32 %v2324_v11, %v2867_v24  ;;  %v2342_v24 = vld [vmem:[%s2621_s16 + $0x38] sm:$0xff]  }
 0x286   : > { %v2326_v15 = vpop.eup %2325  ;;  %1651 = vst.msk [vmem:[%s2874_s9 + $0x28] sm:$0xf] %vm1640_vm6, %v1851_v40  ;;  %v1849_v17 = vpack.c.bf16 %v1568_v9, %v1568_v9  ;;  %2333 = vrcp.f32 %v1511_v63  ;;  %v1558_v29 = vunpack.c.l.bf16 %v2342_v24  ;;  %v1559_v59 = vunpack.c.h.bf16 %v2342_v24 }
 0x287   : > { %v1537_v8 = vmul.f32 %v2326_v15, %v2877_v7  ;;  %v1571_v18 = vadd.f32 %v1555_v10, %v1539_v49 }
 0x288   : > { %1649 = vst.msk [vmem:[%s2874_s9 + $0x20] sm:$0xf] %vm1640_vm6, %v1849_v17 }
 0x289   : > { %v1569_v20 = vadd.f32 %v1553_v62, %v1537_v8  ;;  %v1852_v12 = vpack.c.bf16 %v1571_v18, %v1571_v18 }
 0x28b   : > { %v1850_v22 = vpack.c.bf16 %v1569_v20, %v1569_v20  ;;  %v2328_v27 = vpop.eup %2327  ;;  %1652 = vst.msk [vmem:[%s2874_s9 + $0x2c] sm:$0xf] %vm1640_vm6, %v1852_v12 }
 0x28c   : > { %v1540_v4 = vmul.f32 %v2328_v27, %v2887_v0 }
 0x28d   : > { %1650 = vst.msk [vmem:[%s2874_s9 + $0x24] sm:$0xf] %vm1640_vm6, %v1850_v22 }
 0x28e   : > { %v1572_v7 = vadd.f32 %v1556_v26, %v1540_v4 }
 0x290   : > { %v2330_v30 = vpop.eup %2329  ;;  %v1853_v3 = vpack.c.bf16 %v1572_v7, %v1572_v7 }
 0x291   : > { %v1542_v53 = vmul.f32 %v2330_v30, %v2898_v13 }
 0x292   : > { %v2332_v33 = vpop.eup %2331  ;;  %1653 = vst.msk [vmem:[%s2874_s9 + $0x30] sm:$0xf] %vm1640_vm6, %v1853_v3 }
 0x293   : > { %v2334_v41 = vpop.eup %2333  ;;  %v1574_v34 = vadd.f32 %v1558_v29, %v1542_v53  ;;  %v1541_v35 = vmul.f32 %v2332_v33, %v2900_v16 }
 0x294   : > { %v1543_v0 = vmul.f32 %v2334_v41, %v2906_v28 }
 0x295   : > { %v1855_v36 = vpack.c.bf16 %v1574_v34, %v1574_v34  ;;  %v1573_v37 = vadd.f32 %v1557_v19, %v1541_v35 }
 0x296   : > { %v1575_v52 = vadd.f32 %v1559_v59, %v1543_v0 }
 0x297   : > { %1655 = vst.msk [vmem:[%s2874_s9 + $0x38] sm:$0xf] %vm1640_vm6, %v1855_v36  ;;  %v1854_v13 = vpack.c.bf16 %v1573_v37, %v1573_v37 }
 0x298   : > { %v1856_v39 = vpack.c.bf16 %v1575_v52, %v1575_v52 }
 0x299   : > { %1654 = vst.msk [vmem:[%s2874_s9 + $0x34] sm:$0xf] %vm1640_vm6, %v1854_v13 }
 0x29a   : > { %1656 = vst.msk [vmem:[%s2874_s9 + $0x3c] sm:$0xf] %vm1640_vm6, %v1856_v39 }
 0x29b PF: > { %s2983_s10 = smov %s2580_s18  ;;  %p16_p7 = scmp.ge.s32.totalorder %s2569_s14, 4  }
 0x29c   : > { %s2984_s18 = smov %s2453_s19  ;;  %s2985_s19 = smov %s2457_s20 }
 0x29d   : > { %s2986_s20 = smov %s2983_s10  ;;  %s2987_s21 = smov %s2569_s14 }
 0x29e   :  { %18 = sbr.rel (!%p16_p7) target bundleno = 4 (0x4), region = 88 }
 0x2a3   :  { %1681 = vsyncpa [#allocation3], 1 }
 0x2a4   :  { %1683 = vsyncpa [#allocation3 + $0x1], 1 }
 0x2a5   :  { %1684 = vsyncpa [#allocation5], 1 }

</bundles_post_ra>
